<compile_context>
chip_gen: v7x
topology: tpu7x:2x2x1
jax: 0.10.0
libtpu: 0.0.40
codegen_flags: <defaults>
</compile_context>

<pallas_src>
import functools

import jax
import jax.numpy as jnp
from jax.experimental import pallas as pl
from jax.experimental.pallas import tpu as pltpu

EPS = 1e-5
LANES = 128
STATS_ROWS = 8  # full (8, C) sublane tile so stat stores are unmasked


# ------------------------------ small helpers -------------------------------

def _round_up(x, m):
    return (x + m - 1) // m * m


def _choose_tm(m, target):
    """Largest row tile <= target that divides m and is a multiple of 8."""
    t = min(target, m)
    t -= t % 8
    while t >= 8:
        if m % t == 0:
            return t
        t -= 8
    return m  # TODO(synk): pad M to a tile multiple instead of one mega-block.


def _cparams():
    return pltpu.CompilerParams(
        dimension_semantics=("parallel",),
        vmem_limit_bytes=32 * 1024 * 1024,
    )


def _pad_cols(x, cp):
    c = x.shape[-1]
    if c == cp:
        return x
    pad = [(0, 0)] * (x.ndim - 1) + [(0, cp - c)]
    return jnp.pad(x, pad)


def _pad_matrix_bf16(w, kp, cp):
    k, c = w.shape
    return jnp.zeros((kp, cp), jnp.float32).at[:k, :c].set(w).astype(jnp.bfloat16)


def _stats_tile(acc):
    """Pack per-tile (sum, sumsq) into a full (8, C) tile -> unmasked store."""
    c = acc.shape[-1]
    return jnp.concatenate(
        [jnp.sum(acc, axis=0, keepdims=True),
         jnp.sum(acc * acc, axis=0, keepdims=True),
         jnp.zeros((STATS_ROWS - 2, c), jnp.float32)], axis=0)


def _finalize_bn(stats, gamma_p, beta_p, m):
    """Fold per-tile (sum, sumsq) partials into per-channel scale/shift."""
    s = jnp.sum(stats[:, 0, :], axis=0)
    ss = jnp.sum(stats[:, 1, :], axis=0)
    mean = s / m
    var = jnp.maximum(ss / m - mean * mean, 0.0)          # biased variance
    scale = gamma_p * jax.lax.rsqrt(var + EPS)            # (1, C)
    shift = beta_p - mean * scale                         # (1, C)
    return scale, shift


# ----------------------------- Pallas kernels --------------------------------

def _matmul_stats_kernel(x_ref, w_ref, y_ref, st_ref):
    acc = jnp.dot(x_ref[...].astype(jnp.bfloat16), w_ref[...],
                  preferred_element_type=jnp.float32)
    y_ref[...] = acc.astype(y_ref.dtype)
    st_ref[0] = _stats_tile(acc)


def conv1x1_stats(x2d, w_bf16, tm):
    m, k = x2d.shape
    c = w_bf16.shape[1]
    gm = m // tm
    return pl.pallas_call(
        _matmul_stats_kernel,
        out_shape=(jax.ShapeDtypeStruct((m, c), jnp.bfloat16),
                   jax.ShapeDtypeStruct((gm, STATS_ROWS, c), jnp.float32)),
        grid=(gm,),
        in_specs=[pl.BlockSpec((tm, k), lambda i: (i, 0)),
                  pl.BlockSpec((k, c), lambda i: (0, 0))],
        out_specs=(pl.BlockSpec((tm, c), lambda i: (i, 0)),
                   pl.BlockSpec((1, STATS_ROWS, c), lambda i: (i, 0, 0))),
        compiler_params=_cparams(),
    )(x2d, w_bf16)


def shortcut_conv_stats(x2d, w_bf16, n, rows_per_img, img_rows):
    # Per image, the stride-subsampled pixels (phase (0,0)) are the FIRST
    # `rows_per_img` rows of that image's chunk in the phase-ordered x2d, so
    # the strided 1x1 shortcut conv is pure BlockSpec indexing.
    k = x2d.shape[1]
    c = w_bf16.shape[1]
    blocks_per_img = img_rows // rows_per_img
    return pl.pallas_call(
        _matmul_stats_kernel,
        out_shape=(jax.ShapeDtypeStruct((n * rows_per_img, c), jnp.bfloat16),
                   jax.ShapeDtypeStruct((n, STATS_ROWS, c), jnp.float32)),
        grid=(n,),
        in_specs=[pl.BlockSpec((rows_per_img, k),
                               lambda i: (i * blocks_per_img, 0)),
                  pl.BlockSpec((k, c), lambda i: (0, 0))],
        out_specs=(pl.BlockSpec((rows_per_img, c), lambda i: (i, 0)),
                   pl.BlockSpec((1, STATS_ROWS, c), lambda i: (i, 0, 0))),
        compiler_params=_cparams(),
    )(x2d, w_bf16)


def _conv2_fused_kernel(y1_ref, s1_ref, t1_ref, w2_ref, y2_ref, st_ref,
                        hpad_ref, *, stride):
    # y1_ref : (1, s*s, h2, w2, c) bf16   conv1 output, phase layout
    # s1/t1  : (1, c) f32                 bn1 scale / shift
    # w2_ref : (9*c, cout) bf16           3x3 weights, tap-major rows
    # y2_ref : (1, h2*w2, cout) bf16      conv2 output
    # st_ref : (1, 8, cout) f32           bn2 partial stats
    # hpad_ref: (s*s, Hs, Ws, c) f32 VMEM zero-padded phases of relu(bn1(y1))
    s = stride
    _, _, h2, w2c, c = y1_ref.shape
    ho, wo = h2, w2c

    # bn1 + relu fused here; scatter phases into the zero-initialised scratch
    # with contiguous writes (borders stay zero == spatial padding).
    hpad_ref[...] = jnp.zeros(hpad_ref.shape, hpad_ref.dtype)
    for qy in range(s):
        for qx in range(s):
            hq = jnp.maximum(
                y1_ref[0, qy * s + qx].astype(jnp.float32) * s1_ref[...]
                + t1_ref[...], 0.0)
            py, px = (qy + 1) % s, (qx + 1) % s
            oy = 1 if qy == s - 1 else 0
            ox = 1 if qx == s - 1 else 0
            hpad_ref[py * s + px, pl.ds(oy, h2), pl.ds(ox, w2c), :] = hq

    # 9 taps are contiguous phase slices; merge into one deep (K = 9*c) dot.
    patches = []
    for dy in range(3):
        for dx in range(3):
            p = hpad_ref[(dy % s) * s + (dx % s),
                         pl.ds(dy // s, ho), pl.ds(dx // s, wo), :]
            patches.append(p.reshape(ho * wo, c))
    slab = jnp.concatenate(patches, axis=-1).astype(jnp.bfloat16)
    acc = jnp.dot(slab, w2_ref[...], preferred_element_type=jnp.float32)
    y2_ref[0] = acc.astype(y2_ref.dtype)
    st_ref[0] = _stats_tile(acc)


def conv2_3x3_fused(y1_5d, s1, t1, w2_flat, stride):
    n, ss, h2, w2c, c = y1_5d.shape
    cout = w2_flat.shape[1]
    ho, wo = h2, w2c
    hs = ho + 2 // stride
    ws_ = wo + 2 // stride
    kern = functools.partial(_conv2_fused_kernel, stride=stride)
    return pl.pallas_call(
        kern,
        out_shape=(jax.ShapeDtypeStruct((n, ho * wo, cout), jnp.bfloat16),
                   jax.ShapeDtypeStruct((n, STATS_ROWS, cout), jnp.float32)),
        grid=(n,),
        in_specs=[pl.BlockSpec((1, ss, h2, w2c, c),
                               lambda i: (i, 0, 0, 0, 0)),
                  pl.BlockSpec((1, c), lambda i: (0, 0)),
                  pl.BlockSpec((1, c), lambda i: (0, 0)),
                  pl.BlockSpec((9 * c, cout), lambda i: (0, 0))],
        out_specs=(pl.BlockSpec((1, ho * wo, cout), lambda i: (i, 0, 0)),
                   pl.BlockSpec((1, STATS_ROWS, cout), lambda i: (i, 0, 0))),
        scratch_shapes=[pltpu.VMEM((ss, hs, ws_, c), jnp.float32)],
        compiler_params=_cparams(),
    )(y1_5d, s1, t1, w2_flat)


def _bnrelu_matmul_stats_kernel(y_ref, s_ref, t_ref, w_ref, o_ref, st_ref):
    h = jnp.maximum(y_ref[...].astype(jnp.float32) * s_ref[...] + t_ref[...], 0.0)
    acc = jnp.dot(h.astype(jnp.bfloat16), w_ref[...],
                  preferred_element_type=jnp.float32)
    o_ref[...] = acc.astype(o_ref.dtype)
    st_ref[0] = _stats_tile(acc)


def bnrelu_matmul_stats(y2, scale, shift, w_bf16, tm):
    m, k = y2.shape
    c = w_bf16.shape[1]
    gm = m // tm
    return pl.pallas_call(
        _bnrelu_matmul_stats_kernel,
        out_shape=(jax.ShapeDtypeStruct((m, c), jnp.bfloat16),
                   jax.ShapeDtypeStruct((gm, STATS_ROWS, c), jnp.float32)),
        grid=(gm,),
        in_specs=[pl.BlockSpec((tm, k), lambda i: (i, 0)),
                  pl.BlockSpec((1, k), lambda i: (0, 0)),
                  pl.BlockSpec((1, k), lambda i: (0, 0)),
                  pl.BlockSpec((k, c), lambda i: (0, 0))],
        out_specs=(pl.BlockSpec((tm, c), lambda i: (i, 0)),
                   pl.BlockSpec((1, STATS_ROWS, c), lambda i: (i, 0, 0))),
        compiler_params=_cparams(),
    )(y2, scale, shift, w_bf16)


def _residual_proj_kernel(y3_ref, s3_ref, t3_ref, ys_ref, ss_ref, ts_ref, o_ref):
    main = y3_ref[...].astype(jnp.float32) * s3_ref[...] + t3_ref[...]
    sc = ys_ref[...].astype(jnp.float32) * ss_ref[...] + ts_ref[...]
    o_ref[...] = jnp.maximum(main + sc, 0.0)


def residual_proj(y3, s3, t3, ys, ss, ts, tm):
    m, c = y3.shape
    gm = m // tm
    vec = pl.BlockSpec((1, c), lambda i: (0, 0))
    til = pl.BlockSpec((tm, c), lambda i: (i, 0))
    return pl.pallas_call(
        _residual_proj_kernel,
        out_shape=jax.ShapeDtypeStruct((m, c), jnp.float32),
        grid=(gm,),
        in_specs=[til, vec, vec, til, vec, vec],
        out_specs=til,
        compiler_params=_cparams(),
    )(y3, s3, t3, ys, ss, ts)


def _residual_id_kernel(y3_ref, s3_ref, t3_ref, sc_ref, o_ref):
    o_ref[...] = jnp.maximum(
        y3_ref[...].astype(jnp.float32) * s3_ref[...] + t3_ref[...]
        + sc_ref[...].astype(jnp.float32), 0.0)


def residual_id(y3, s3, t3, sc, tm):
    m, c = y3.shape
    gm = m // tm
    vec = pl.BlockSpec((1, c), lambda i: (0, 0))
    til = pl.BlockSpec((tm, c), lambda i: (i, 0))
    return pl.pallas_call(
        _residual_id_kernel,
        out_shape=jax.ShapeDtypeStruct((m, c), jnp.float32),
        grid=(gm,),
        in_specs=[til, vec, vec, til],
        out_specs=til,
        compiler_params=_cparams(),
    )(y3, s3, t3, sc)


# --------------------------------- forward -----------------------------------

def bottleneck_block_forward(x_nchw, params, stride):
    n, cin, h, w = x_nchw.shape
    c = params["w1"].shape[1]
    c4 = 4 * c
    if h % stride or w % stride:
        raise NotImplementedError("H, W must be divisible by stride")
    proj = (stride != 1) or (cin != c4)

    c_p = _round_up(c, LANES)
    c4_p = _round_up(c4, LANES)
    # Contraction-only dims: sublane granule padding only (not 128).
    cin_p = _round_up(cin, 8) if proj else c4_p

    s = stride
    h2, w2c = h // s, w // s
    ho, wo = h2, w2c
    m0 = n * h * w
    mo = n * ho * wo
    assert (h2 * w2c) % 8 == 0

    # Phase-major NHWC: x_ph[n, qy, qx, a, b, ci] = x[n, ci, s*a+qy, s*b+qx].
    # One XLA transpose (same cost class as NCHW->NHWC); makes every conv2 tap
    # and the shortcut subsample a contiguous slice.
    x_ph = x_nchw.astype(jnp.float32).reshape(n, cin, h2, s, w2c, s)
    x_ph = jnp.transpose(x_ph, (0, 3, 5, 2, 4, 1))       # (n, s, s, h2, w2, cin)
    x2d = _pad_cols(x_ph, cin_p).reshape(m0, cin_p)

    # bf16 weights (MXU-native); padded gamma/beta are zero so padded channels
    # stay identically zero through every stage and are sliced off at the end.
    w1 = _pad_matrix_bf16(params["w1"], cin_p, c_p)
    w2 = jnp.zeros((3, 3, c_p, c_p), jnp.float32).at[:, :, :c, :c].set(params["w2"])
    w2 = w2.reshape(9 * c_p, c_p).astype(jnp.bfloat16)    # tap-major rows
    w3 = _pad_matrix_bf16(params["w3"], c_p, c4_p)
    g1, b1 = _pad_cols(params["g1"], c_p), _pad_cols(params["b1"], c_p)
    g2, b2 = _pad_cols(params["g2"], c_p), _pad_cols(params["b2"], c_p)
    g3, b3 = _pad_cols(params["g3"], c4_p), _pad_cols(params["b3"], c4_p)

    # conv1 (1x1) + bn1 partial stats (two-pass BN, M-tiled)
    tm0 = _choose_tm(m0, 256)
    y1, st1 = conv1x1_stats(x2d, w1, tm0)
    s1, t1 = _finalize_bn(st1, g1, b1, m0)

    # bn1 + relu fused into conv2 (3x3, stride, pad=1); h1 never hits HBM.
    y1_5d = y1.reshape(n, s * s, h2, w2c, c_p)
    y2, st2 = conv2_3x3_fused(y1_5d, s1, t1, w2, s)
    s2, t2 = _finalize_bn(st2, g2, b2, mo)

    # bn2 + relu + conv3 (1x1) fused; emits bn3 partial stats.
    tmo = _choose_tm(mo, 256)
    y3, st3 = bnrelu_matmul_stats(y2.reshape(mo, c_p), s2, t2, w3, tmo)
    s3, t3 = _finalize_bn(st3, g3, b3, mo)

    # shortcut + add + relu (bigger tiles for the HBM-bound elementwise pass)
    tm_e = _choose_tm(mo, 512)
    if proj:
        ws_ = _pad_matrix_bf16(params["ws"], cin_p, c4_p)
        gs, bs = _pad_cols(params["gs"], c4_p), _pad_cols(params["bs"], c4_p)
        ysc, sts = shortcut_conv_stats(x2d, ws_, n, h2 * w2c, h * w)
        ssc, tsc = _finalize_bn(sts, gs, bs, mo)
        out = residual_proj(y3, s3, t3, ysc, ssc, tsc, tm_e)
    else:
        out = residual_id(y3, s3, t3, x2d, tm_e)

    out = out.reshape(n, ho, wo, c4_p)[:, :, :, :c4]
    return jnp.transpose(out, (0, 3, 1, 2))               # NCHW


# ----------------------- deterministic parameter init ------------------------

def init_params(key, in_channels, out_channels):
    C = out_channels
    ks = jax.random.split(key, 12)
    sc = 0.1
    return {
        "w1": sc * jax.random.normal(ks[0], (in_channels, C), jnp.float32),
        "w2": sc * jax.random.normal(ks[1], (3, 3, C, C), jnp.float32),       # HWIO
        "w3": sc * jax.random.normal(ks[2], (C, 4 * C), jnp.float32),
        "ws": sc * jax.random.normal(ks[3], (in_channels, 4 * C), jnp.float32),
        "g1": 1.0 + 0.1 * jax.random.normal(ks[4], (1, C), jnp.float32),
        "b1": 0.1 * jax.random.normal(ks[5], (1, C), jnp.float32),
        "g2": 1.0 + 0.1 * jax.random.normal(ks[6], (1, C), jnp.float32),
        "b2": 0.1 * jax.random.normal(ks[7], (1, C), jnp.float32),
        "g3": 1.0 + 0.1 * jax.random.normal(ks[8], (1, 4 * C), jnp.float32),
        "b3": 0.1 * jax.random.normal(ks[9], (1, 4 * C), jnp.float32),
        "gs": 1.0 + 0.1 * jax.random.normal(ks[10], (1, 4 * C), jnp.float32),
        "bs": 0.1 * jax.random.normal(ks[11], (1, 4 * C), jnp.float32),
    }


# ------------------------------- pure-JAX ref ---------------------------------

def _ref_forward(x_nchw, p, stride):
    def bn(y, g, b):  # NHWC, training-mode stats over (N,H,W)
        mean = jnp.mean(y, axis=(0, 1, 2), keepdims=True)
        var = jnp.mean((y - mean) ** 2, axis=(0, 1, 2), keepdims=True)
        return (y - mean) * jax.lax.rsqrt(var + EPS) * g.reshape(1, 1, 1, -1) \
            + b.reshape(1, 1, 1, -1)

    dn = ("NHWC", "HWIO", "NHWC")
    x = jnp.transpose(x_nchw, (0, 2, 3, 1)).astype(jnp.float32)
    h = jax.nn.relu(bn(jax.lax.conv_general_dilated(
        x, p["w1"][None, None], (1, 1), "VALID", dimension_numbers=dn),
        p["g1"], p["b1"]))
    h = jax.nn.relu(bn(jax.lax.conv_general_dilated(
        h, p["w2"], (stride, stride), ((1, 1), (1, 1)), dimension_numbers=dn),
        p["g2"], p["b2"]))
    h = bn(jax.lax.conv_general_dilated(
        h, p["w3"][None, None], (1, 1), "VALID", dimension_numbers=dn),
        p["g3"], p["b3"])
    Cin, C = p["w1"].shape
    if stride != 1 or Cin != 4 * C:
        sc = bn(jax.lax.conv_general_dilated(
            x, p["ws"][None, None], (stride, stride), "VALID",
            dimension_numbers=dn), p["gs"], p["bs"])
    else:
        sc = x
    out = jax.nn.relu(h + sc)
    return jnp.transpose(out, (0, 3, 1, 2))


# ------------------------------------ main ------------------------------------

if __name__ == "__main__":
    key = jax.random.PRNGKey(0)
    kx, kp = jax.random.split(key)

    N, Cin, H, W = 2, 8, 16, 16
    out_channels, stride = 8, 2

    x = jax.random.normal(kx, (N, Cin, H, W), jnp.float32)
    params = init_params(kp, Cin, out_channels)

    fwd = jax.jit(functools.partial(bottleneck_block_forward, stride=stride))
    out = jax.block_until_ready(fwd(x, params))

    assert out.shape == (N, 4 * out_channels, H // stride, W // stride), out.shape

    ref = jax.block_until_ready(_ref_forward(x, params, stride))
    max_err = float(jnp.max(jnp.abs(out - ref)))
    # Tolerance accounts for bf16 MXU operands / bf16 intermediates vs an
    # all-f32 reference (per perf guidance); accumulation and BN stats are f32.
    assert jnp.allclose(out, ref, rtol=1e-1, atol=1e-1), max_err

    print("KERNEL_OK")
</pallas_src>

<mosaic_0001>
module attributes {stable_mosaic.version = 11 : i64} {
  func.func @_conv2_fused_kernel(%arg0: i32, %arg1: memref<1x4x8x8x128xbf16, #tpu.memory_space<vmem>>, %arg2: memref<1x128xf32, #tpu.memory_space<vmem>>, %arg3: memref<1x128xf32, #tpu.memory_space<vmem>>, %arg4: memref<1152x128xbf16, #tpu.memory_space<vmem>>, %arg5: memref<1x64x128xbf16, #tpu.memory_space<vmem>>, %arg6: memref<1x8x128xf32, #tpu.memory_space<vmem>>, %arg7: memref<4x9x9x128xf32, #tpu.memory_space<vmem>>) attributes {dimension_semantics = [#tpu.dimension_semantics<parallel>], iteration_bounds = array<i64: 2>, scalar_prefetch = 0 : i64, scratch_operands = 1 : i64, tpu.core_type = #tpu.core_type<tc>, window_params = [{transform_indices = @transform_0, window_bounds = array<i64: 1, 4, 8, 8, 128>}, {pipeline_mode = #tpu.pipeline_mode<synchronous>, transform_indices = @transform_1, window_bounds = array<i64: 1, 128>}, {pipeline_mode = #tpu.pipeline_mode<synchronous>, transform_indices = @transform_2, window_bounds = array<i64: 1, 128>}, {pipeline_mode = #tpu.pipeline_mode<synchronous>, transform_indices = @transform_3, window_bounds = array<i64: 1152, 128>}, {transform_indices = @transform_4, window_bounds = array<i64: 1, 64, 128>}, {transform_indices = @transform_5, window_bounds = array<i64: 1, 8, 128>}]} {
    %cst = arith.constant 0.000000e+00 : f32
    %0 = vector.broadcast %cst : f32 to vector<4x9x9x128xf32>
    %c0 = arith.constant 0 : index
    %c0_0 = arith.constant 0 : index
    %c0_1 = arith.constant 0 : index
    %c0_2 = arith.constant 0 : index
    %1 = vector.load %arg7[%c0, %c0_0, %c0_1, %c0_2] : memref<4x9x9x128xf32, #tpu.memory_space<vmem>>, vector<4x9x9x128xf32>
    tpu.vector_store %arg7[%c0, %c0_0, %c0_1, %c0_2], %0 {strides = array<i32>} : memref<4x9x9x128xf32, #tpu.memory_space<vmem>>, vector<4x9x9x128xf32>,
    %c0_3 = arith.constant 0 : index
    %c0_4 = arith.constant 0 : index
    %c0_5 = arith.constant 0 : index
    %c0_6 = arith.constant 0 : index
    %c0_7 = arith.constant 0 : index
    %2 = vector.load %arg1[%c0_3, %c0_4, %c0_5, %c0_6, %c0_7] : memref<1x4x8x8x128xbf16, #tpu.memory_space<vmem>>, vector<1x1x8x8x128xbf16>
    %3 = vector.shape_cast %2 : vector<1x1x8x8x128xbf16> to vector<8x8x128xbf16>
    %4 = arith.extf %3 : vector<8x8x128xbf16> to vector<8x8x128xf32>
    %c0_8 = arith.constant 0 : index
    %c0_9 = arith.constant 0 : index
    %5 = vector.load %arg2[%c0_8, %c0_9] : memref<1x128xf32, #tpu.memory_space<vmem>>, vector<1x128xf32>
    %6 = vector.shape_cast %5 : vector<1x128xf32> to vector<1x1x128xf32>
    %7 = vector.broadcast %6 : vector<1x1x128xf32> to vector<8x8x128xf32>
    %8 = arith.mulf %4, %7 : vector<8x8x128xf32>
    %c0_10 = arith.constant 0 : index
    %c0_11 = arith.constant 0 : index
    %9 = vector.load %arg3[%c0_10, %c0_11] : memref<1x128xf32, #tpu.memory_space<vmem>>, vector<1x128xf32>
    %10 = vector.shape_cast %9 : vector<1x128xf32> to vector<1x1x128xf32>
    %11 = vector.broadcast %10 : vector<1x1x128xf32> to vector<8x8x128xf32>
    %12 = arith.addf %8, %11 : vector<8x8x128xf32>
    %cst_12 = arith.constant 0.000000e+00 : f32
    %13 = vector.broadcast %cst_12 : f32 to vector<8x8x128xf32>
    %14 = arith.maximumf %12, %13 : vector<8x8x128xf32>
    %c3 = arith.constant 3 : index
    %c0_13 = arith.constant 0 : index
    %c0_14 = arith.constant 0 : index
    %c0_15 = arith.constant 0 : index
    %15 = vector.load %arg7[%c3, %c0_13, %c0_14, %c0_15] : memref<4x9x9x128xf32, #tpu.memory_space<vmem>>, vector<1x8x8x128xf32>
    %16 = vector.shape_cast %15 : vector<1x8x8x128xf32> to vector<8x8x128xf32>
    %17 = vector.shape_cast %14 : vector<8x8x128xf32> to vector<1x8x8x128xf32>
    tpu.vector_store %arg7[%c3, %c0_13, %c0_14, %c0_15], %17 {strides = array<i32>} : memref<4x9x9x128xf32, #tpu.memory_space<vmem>>, vector<1x8x8x128xf32>,
    %c0_16 = arith.constant 0 : index
    %c1 = arith.constant 1 : index
    %c0_17 = arith.constant 0 : index
    %c0_18 = arith.constant 0 : index
    %c0_19 = arith.constant 0 : index
    %18 = vector.load %arg1[%c0_16, %c1, %c0_17, %c0_18, %c0_19] : memref<1x4x8x8x128xbf16, #tpu.memory_space<vmem>>, vector<1x1x8x8x128xbf16>
    %19 = vector.shape_cast %18 : vector<1x1x8x8x128xbf16> to vector<8x8x128xbf16>
    %20 = arith.extf %19 : vector<8x8x128xbf16> to vector<8x8x128xf32>
    %c0_20 = arith.constant 0 : index
    %c0_21 = arith.constant 0 : index
    %21 = vector.load %arg2[%c0_20, %c0_21] : memref<1x128xf32, #tpu.memory_space<vmem>>, vector<1x128xf32>
    %22 = vector.shape_cast %21 : vector<1x128xf32> to vector<1x1x128xf32>
    %23 = vector.broadcast %22 : vector<1x1x128xf32> to vector<8x8x128xf32>
    %24 = arith.mulf %20, %23 : vector<8x8x128xf32>
    %c0_22 = arith.constant 0 : index
    %c0_23 = arith.constant 0 : index
    %25 = vector.load %arg3[%c0_22, %c0_23] : memref<1x128xf32, #tpu.memory_space<vmem>>, vector<1x128xf32>
    %26 = vector.shape_cast %25 : vector<1x128xf32> to vector<1x1x128xf32>
    %27 = vector.broadcast %26 : vector<1x1x128xf32> to vector<8x8x128xf32>
    %28 = arith.addf %24, %27 : vector<8x8x128xf32>
    %cst_24 = arith.constant 0.000000e+00 : f32
    %29 = vector.broadcast %cst_24 : f32 to vector<8x8x128xf32>
    %30 = arith.maximumf %28, %29 : vector<8x8x128xf32>
    %c2 = arith.constant 2 : index
    %c0_25 = arith.constant 0 : index
    %c1_26 = arith.constant 1 : index
    %c0_27 = arith.constant 0 : index
    %31 = vector.load %arg7[%c2, %c0_25, %c1_26, %c0_27] : memref<4x9x9x128xf32, #tpu.memory_space<vmem>>, vector<1x8x8x128xf32>
    %32 = vector.shape_cast %31 : vector<1x8x8x128xf32> to vector<8x8x128xf32>
    %33 = vector.shape_cast %30 : vector<8x8x128xf32> to vector<1x8x8x128xf32>
    tpu.vector_store %arg7[%c2, %c0_25, %c1_26, %c0_27], %33 {strides = array<i32>} : memref<4x9x9x128xf32, #tpu.memory_space<vmem>>, vector<1x8x8x128xf32>,
    %c0_28 = arith.constant 0 : index
    %c2_29 = arith.constant 2 : index
    %c0_30 = arith.constant 0 : index
    %c0_31 = arith.constant 0 : index
    %c0_32 = arith.constant 0 : index
    %34 = vector.load %arg1[%c0_28, %c2_29, %c0_30, %c0_31, %c0_32] : memref<1x4x8x8x128xbf16, #tpu.memory_space<vmem>>, vector<1x1x8x8x128xbf16>
    %35 = vector.shape_cast %34 : vector<1x1x8x8x128xbf16> to vector<8x8x128xbf16>
    %36 = arith.extf %35 : vector<8x8x128xbf16> to vector<8x8x128xf32>
    %c0_33 = arith.constant 0 : index
    %c0_34 = arith.constant 0 : index
    %37 = vector.load %arg2[%c0_33, %c0_34] : memref<1x128xf32, #tpu.memory_space<vmem>>, vector<1x128xf32>
    %38 = vector.shape_cast %37 : vector<1x128xf32> to vector<1x1x128xf32>
    %39 = vector.broadcast %38 : vector<1x1x128xf32> to vector<8x8x128xf32>
    %40 = arith.mulf %36, %39 : vector<8x8x128xf32>
    %c0_35 = arith.constant 0 : index
    %c0_36 = arith.constant 0 : index
    %41 = vector.load %arg3[%c0_35, %c0_36] : memref<1x128xf32, #tpu.memory_space<vmem>>, vector<1x128xf32>
    %42 = vector.shape_cast %41 : vector<1x128xf32> to vector<1x1x128xf32>
    %43 = vector.broadcast %42 : vector<1x1x128xf32> to vector<8x8x128xf32>
    %44 = arith.addf %40, %43 : vector<8x8x128xf32>
    %cst_37 = arith.constant 0.000000e+00 : f32
    %45 = vector.broadcast %cst_37 : f32 to vector<8x8x128xf32>
    %46 = arith.maximumf %44, %45 : vector<8x8x128xf32>
    %c1_38 = arith.constant 1 : index
    %c1_39 = arith.constant 1 : index
    %c0_40 = arith.constant 0 : index
    %c0_41 = arith.constant 0 : index
    %47 = vector.load %arg7[%c1_38, %c1_39, %c0_40, %c0_41] : memref<4x9x9x128xf32, #tpu.memory_space<vmem>>, vector<1x8x8x128xf32>
    %48 = vector.shape_cast %47 : vector<1x8x8x128xf32> to vector<8x8x128xf32>
    %49 = vector.shape_cast %46 : vector<8x8x128xf32> to vector<1x8x8x128xf32>
    tpu.vector_store %arg7[%c1_38, %c1_39, %c0_40, %c0_41], %49 {strides = array<i32>} : memref<4x9x9x128xf32, #tpu.memory_space<vmem>>, vector<1x8x8x128xf32>,
    %c0_42 = arith.constant 0 : index
    %c3_43 = arith.constant 3 : index
    %c0_44 = arith.constant 0 : index
    %c0_45 = arith.constant 0 : index
    %c0_46 = arith.constant 0 : index
    %50 = vector.load %arg1[%c0_42, %c3_43, %c0_44, %c0_45, %c0_46] : memref<1x4x8x8x128xbf16, #tpu.memory_space<vmem>>, vector<1x1x8x8x128xbf16>
    %51 = vector.shape_cast %50 : vector<1x1x8x8x128xbf16> to vector<8x8x128xbf16>
    %52 = arith.extf %51 : vector<8x8x128xbf16> to vector<8x8x128xf32>
    %c0_47 = arith.constant 0 : index
    %c0_48 = arith.constant 0 : index
    %53 = vector.load %arg2[%c0_47, %c0_48] : memref<1x128xf32, #tpu.memory_space<vmem>>, vector<1x128xf32>
    %54 = vector.shape_cast %53 : vector<1x128xf32> to vector<1x1x128xf32>
    %55 = vector.broadcast %54 : vector<1x1x128xf32> to vector<8x8x128xf32>
    %56 = arith.mulf %52, %55 : vector<8x8x128xf32>
    %c0_49 = arith.constant 0 : index
    %c0_50 = arith.constant 0 : index
    %57 = vector.load %arg3[%c0_49, %c0_50] : memref<1x128xf32, #tpu.memory_space<vmem>>, vector<1x128xf32>
    %58 = vector.shape_cast %57 : vector<1x128xf32> to vector<1x1x128xf32>
    %59 = vector.broadcast %58 : vector<1x1x128xf32> to vector<8x8x128xf32>
    %60 = arith.addf %56, %59 : vector<8x8x128xf32>
    %cst_51 = arith.constant 0.000000e+00 : f32
    %61 = vector.broadcast %cst_51 : f32 to vector<8x8x128xf32>
    %62 = arith.maximumf %60, %61 : vector<8x8x128xf32>
    %c0_52 = arith.constant 0 : index
    %c1_53 = arith.constant 1 : index
    %c1_54 = arith.constant 1 : index
    %c0_55 = arith.constant 0 : index
    %63 = vector.load %arg7[%c0_52, %c1_53, %c1_54, %c0_55] : memref<4x9x9x128xf32, #tpu.memory_space<vmem>>, vector<1x8x8x128xf32>
    %64 = vector.shape_cast %63 : vector<1x8x8x128xf32> to vector<8x8x128xf32>
    %65 = vector.shape_cast %62 : vector<8x8x128xf32> to vector<1x8x8x128xf32>
    tpu.vector_store %arg7[%c0_52, %c1_53, %c1_54, %c0_55], %65 {strides = array<i32>} : memref<4x9x9x128xf32, #tpu.memory_space<vmem>>, vector<1x8x8x128xf32>,
    %c0_56 = arith.constant 0 : index
    %c0_57 = arith.constant 0 : index
    %c0_58 = arith.constant 0 : index
    %c0_59 = arith.constant 0 : index
    %66 = vector.load %arg7[%c0_56, %c0_57, %c0_58, %c0_59] : memref<4x9x9x128xf32, #tpu.memory_space<vmem>>, vector<1x8x8x128xf32>
    %67 = vector.shape_cast %66 : vector<1x8x8x128xf32> to vector<8x8x128xf32>
    %68 = vector.shape_cast %67 : vector<8x8x128xf32> to vector<64x128xf32>
    %c1_60 = arith.constant 1 : index
    %c0_61 = arith.constant 0 : index
    %c0_62 = arith.constant 0 : index
    %c0_63 = arith.constant 0 : index
    %69 = vector.load %arg7[%c1_60, %c0_61, %c0_62, %c0_63] : memref<4x9x9x128xf32, #tpu.memory_space<vmem>>, vector<1x8x8x128xf32>
    %70 = vector.shape_cast %69 : vector<1x8x8x128xf32> to vector<8x8x128xf32>
    %71 = vector.shape_cast %70 : vector<8x8x128xf32> to vector<64x128xf32>
    %c0_64 = arith.constant 0 : index
    %c0_65 = arith.constant 0 : index
    %c1_66 = arith.constant 1 : index
    %c0_67 = arith.constant 0 : index
    %72 = vector.load %arg7[%c0_64, %c0_65, %c1_66, %c0_67] : memref<4x9x9x128xf32, #tpu.memory_space<vmem>>, vector<1x8x8x128xf32>
    %73 = vector.shape_cast %72 : vector<1x8x8x128xf32> to vector<8x8x128xf32>
    %74 = vector.shape_cast %73 : vector<8x8x128xf32> to vector<64x128xf32>
    %c2_68 = arith.constant 2 : index
    %c0_69 = arith.constant 0 : index
    %c0_70 = arith.constant 0 : index
    %c0_71 = arith.constant 0 : index
    %75 = vector.load %arg7[%c2_68, %c0_69, %c0_70, %c0_71] : memref<4x9x9x128xf32, #tpu.memory_space<vmem>>, vector<1x8x8x128xf32>
    %76 = vector.shape_cast %75 : vector<1x8x8x128xf32> to vector<8x8x128xf32>
    %77 = vector.shape_cast %76 : vector<8x8x128xf32> to vector<64x128xf32>
    %c3_72 = arith.constant 3 : index
    %c0_73 = arith.constant 0 : index
    %c0_74 = arith.constant 0 : index
    %c0_75 = arith.constant 0 : index
    %78 = vector.load %arg7[%c3_72, %c0_73, %c0_74, %c0_75] : memref<4x9x9x128xf32, #tpu.memory_space<vmem>>, vector<1x8x8x128xf32>
    %79 = vector.shape_cast %78 : vector<1x8x8x128xf32> to vector<8x8x128xf32>
    %80 = vector.shape_cast %79 : vector<8x8x128xf32> to vector<64x128xf32>
    %c2_76 = arith.constant 2 : index
    %c0_77 = arith.constant 0 : index
    %c1_78 = arith.constant 1 : index
    %c0_79 = arith.constant 0 : index
    %81 = vector.load %arg7[%c2_76, %c0_77, %c1_78, %c0_79] : memref<4x9x9x128xf32, #tpu.memory_space<vmem>>, vector<1x8x8x128xf32>
    %82 = vector.shape_cast %81 : vector<1x8x8x128xf32> to vector<8x8x128xf32>
    %83 = vector.shape_cast %82 : vector<8x8x128xf32> to vector<64x128xf32>
    %c0_80 = arith.constant 0 : index
    %c1_81 = arith.constant 1 : index
    %c0_82 = arith.constant 0 : index
    %c0_83 = arith.constant 0 : index
    %84 = vector.load %arg7[%c0_80, %c1_81, %c0_82, %c0_83] : memref<4x9x9x128xf32, #tpu.memory_space<vmem>>, vector<1x8x8x128xf32>
    %85 = vector.shape_cast %84 : vector<1x8x8x128xf32> to vector<8x8x128xf32>
    %86 = vector.shape_cast %85 : vector<8x8x128xf32> to vector<64x128xf32>
    %c1_84 = arith.constant 1 : index
    %c1_85 = arith.constant 1 : index
    %c0_86 = arith.constant 0 : index
    %c0_87 = arith.constant 0 : index
    %87 = vector.load %arg7[%c1_84, %c1_85, %c0_86, %c0_87] : memref<4x9x9x128xf32, #tpu.memory_space<vmem>>, vector<1x8x8x128xf32>
    %88 = vector.shape_cast %87 : vector<1x8x8x128xf32> to vector<8x8x128xf32>
    %89 = vector.shape_cast %88 : vector<8x8x128xf32> to vector<64x128xf32>
    %c0_88 = arith.constant 0 : index
    %c1_89 = arith.constant 1 : index
    %c1_90 = arith.constant 1 : index
    %c0_91 = arith.constant 0 : index
    %90 = vector.load %arg7[%c0_88, %c1_89, %c1_90, %c0_91] : memref<4x9x9x128xf32, #tpu.memory_space<vmem>>, vector<1x8x8x128xf32>
    %91 = vector.shape_cast %90 : vector<1x8x8x128xf32> to vector<8x8x128xf32>
    %92 = vector.shape_cast %91 : vector<8x8x128xf32> to vector<64x128xf32>
    %93 = tpu.concatenate %68, %71, %74, %77, %80, %83, %86, %89, %92 in 1 : vector<64x128xf32>, vector<64x128xf32>, vector<64x128xf32>, vector<64x128xf32>, vector<64x128xf32>, vector<64x128xf32>, vector<64x128xf32>, vector<64x128xf32>, vector<64x128xf32> -> vector<64x1152xf32>
    %94 = arith.truncf %93 : vector<64x1152xf32> to vector<64x1152xbf16>
    %c0_92 = arith.constant 0 : index
    %c0_93 = arith.constant 0 : index
    %95 = vector.load %arg4[%c0_92, %c0_93] : memref<1152x128xbf16, #tpu.memory_space<vmem>>, vector<1152x128xbf16>
    %cst_94 = arith.constant dense<0.000000e+00> : vector<64x128xf32>
    %96 = tpu.matmul %94, %95, %cst_94 {dimension_numbers = #tpu.dot_dimension_numbers<[1], [0], [0], [1], [0, 0, 1, 1], [], []>} : vector<64x1152xbf16>, vector<1152x128xbf16>, vector<64x128xf32> -> vector<64x128xf32>
    %97 = arith.truncf %96 : vector<64x128xf32> to vector<64x128xbf16>
    %c0_95 = arith.constant 0 : index
    %c0_96 = arith.constant 0 : index
    %c0_97 = arith.constant 0 : index
    %98 = vector.load %arg5[%c0_95, %c0_96, %c0_97] : memref<1x64x128xbf16, #tpu.memory_space<vmem>>, vector<1x64x128xbf16>
    %99 = vector.shape_cast %98 : vector<1x64x128xbf16> to vector<64x128xbf16>
    %100 = vector.shape_cast %97 : vector<64x128xbf16> to vector<1x64x128xbf16>
    tpu.vector_store %arg5[%c0_95, %c0_96, %c0_97], %100 {strides = array<i32>} : memref<1x64x128xbf16, #tpu.memory_space<vmem>>, vector<1x64x128xbf16>,
    %cst_98 = arith.constant dense<0.000000e+00> : vector<128xf32>
    %101 = vector.multi_reduction <add>, %96, %cst_98 [0] : vector<64x128xf32> to vector<128xf32>
    %102 = vector.shape_cast %101 : vector<128xf32> to vector<1x128xf32>
    %103 = arith.mulf %96, %96 : vector<64x128xf32>
    %cst_99 = arith.constant dense<0.000000e+00> : vector<128xf32>
    %104 = vector.multi_reduction <add>, %103, %cst_99 [0] : vector<64x128xf32> to vector<128xf32>
    %105 = vector.shape_cast %104 : vector<128xf32> to vector<1x128xf32>
    %cst_100 = arith.constant 0.000000e+00 : f32
    %106 = vector.broadcast %cst_100 : f32 to vector<6x128xf32>
    %107 = tpu.concatenate %102, %105, %106 in 0 : vector<1x128xf32>, vector<1x128xf32>, vector<6x128xf32> -> vector<8x128xf32>
    %c0_101 = arith.constant 0 : index
    %c0_102 = arith.constant 0 : index
    %c0_103 = arith.constant 0 : index
    %108 = vector.load %arg6[%c0_101, %c0_102, %c0_103] : memref<1x8x128xf32, #tpu.memory_space<vmem>>, vector<1x8x128xf32>
    %109 = vector.shape_cast %108 : vector<1x8x128xf32> to vector<8x128xf32>
    %110 = vector.shape_cast %107 : vector<8x128xf32> to vector<1x8x128xf32>
    tpu.vector_store %arg6[%c0_101, %c0_102, %c0_103], %110 {strides = array<i32>} : memref<1x8x128xf32, #tpu.memory_space<vmem>>, vector<1x8x128xf32>,
    return
  }
  func.func @transform_0(%arg0: i32) -> (i32, i32, i32, i32, i32) {
    %c0_i32 = arith.constant 0 : i32
    %c0_i32_0 = arith.constant 0 : i32
    %c0_i32_1 = arith.constant 0 : i32
    %c0_i32_2 = arith.constant 0 : i32
    %c0_i32_3 = arith.constant 0 : i32
    return %arg0, %c0_i32, %c0_i32_0, %c0_i32_1, %c0_i32_2 : i32, i32, i32, i32, i32
  }
  func.func @transform_1(%arg0: i32) -> (i32, i32) {
    %c0_i32 = arith.constant 0 : i32
    %c0_i32_0 = arith.constant 0 : i32
    %c0_i32_1 = arith.constant 0 : i32
    return %c0_i32, %c0_i32_0 : i32, i32
  }
  func.func @transform_2(%arg0: i32) -> (i32, i32) {
    %c0_i32 = arith.constant 0 : i32
    %c0_i32_0 = arith.constant 0 : i32
    %c0_i32_1 = arith.constant 0 : i32
    return %c0_i32, %c0_i32_0 : i32, i32
  }
  func.func @transform_3(%arg0: i32) -> (i32, i32) {
    %c0_i32 = arith.constant 0 : i32
    %c0_i32_0 = arith.constant 0 : i32
    %c0_i32_1 = arith.constant 0 : i32
    return %c0_i32, %c0_i32_0 : i32, i32
  }
  func.func @transform_4(%arg0: i32) -> (i32, i32, i32) {
    %c0_i32 = arith.constant 0 : i32
    %c0_i32_0 = arith.constant 0 : i32
    %c0_i32_1 = arith.constant 0 : i32
    return %arg0, %c0_i32, %c0_i32_0 : i32, i32, i32
  }
  func.func @transform_5(%arg0: i32) -> (i32, i32, i32) {
    %c0_i32 = arith.constant 0 : i32
    %c0_i32_0 = arith.constant 0 : i32
    %c0_i32_1 = arith.constant 0 : i32
    return %arg0, %c0_i32, %c0_i32_0 : i32, i32, i32
  }
}

module attributes {stable_mosaic.version = 11 : i64} {
  func.func @_matmul_stats_kernel(%arg0: i32, %arg1: memref<64x8xf32, #tpu.memory_space<vmem>>, %arg2: memref<8x128xbf16, #tpu.memory_space<vmem>>, %arg3: memref<64x128xbf16, #tpu.memory_space<vmem>>, %arg4: memref<1x8x128xf32, #tpu.memory_space<vmem>>) attributes {dimension_semantics = [#tpu.dimension_semantics<parallel>], iteration_bounds = array<i64: 2>, scalar_prefetch = 0 : i64, scratch_operands = 0 : i64, tpu.core_type = #tpu.core_type<tc>, window_params = [{transform_indices = @transform_0, window_bounds = array<i64: 64, 8>}, {pipeline_mode = #tpu.pipeline_mode<synchronous>, transform_indices = @transform_1, window_bounds = array<i64: 8, 128>}, {transform_indices = @transform_2, window_bounds = array<i64: 64, 128>}, {transform_indices = @transform_3, window_bounds = array<i64: 1, 8, 128>}]} {
    %c0 = arith.constant 0 : index
    %c0_0 = arith.constant 0 : index
    %0 = vector.load %arg1[%c0, %c0_0] : memref<64x8xf32, #tpu.memory_space<vmem>>, vector<64x8xf32>
    %1 = arith.truncf %0 : vector<64x8xf32> to vector<64x8xbf16>
    %c0_1 = arith.constant 0 : index
    %c0_2 = arith.constant 0 : index
    %2 = vector.load %arg2[%c0_1, %c0_2] : memref<8x128xbf16, #tpu.memory_space<vmem>>, vector<8x128xbf16>
    %cst = arith.constant dense<0.000000e+00> : vector<64x128xf32>
    %3 = tpu.matmul %1, %2, %cst {dimension_numbers = #tpu.dot_dimension_numbers<[1], [0], [0], [1], [0, 0, 1, 1], [], []>} : vector<64x8xbf16>, vector<8x128xbf16>, vector<64x128xf32> -> vector<64x128xf32>
    %4 = arith.truncf %3 : vector<64x128xf32> to vector<64x128xbf16>
    %c0_3 = arith.constant 0 : index
    %c0_4 = arith.constant 0 : index
    %5 = vector.load %arg3[%c0_3, %c0_4] : memref<64x128xbf16, #tpu.memory_space<vmem>>, vector<64x128xbf16>
    tpu.vector_store %arg3[%c0_3, %c0_4], %4 {strides = array<i32>} : memref<64x128xbf16, #tpu.memory_space<vmem>>, vector<64x128xbf16>,
    %cst_5 = arith.constant dense<0.000000e+00> : vector<128xf32>
    %6 = vector.multi_reduction <add>, %3, %cst_5 [0] : vector<64x128xf32> to vector<128xf32>
    %7 = vector.shape_cast %6 : vector<128xf32> to vector<1x128xf32>
    %8 = arith.mulf %3, %3 : vector<64x128xf32>
    %cst_6 = arith.constant dense<0.000000e+00> : vector<128xf32>
    %9 = vector.multi_reduction <add>, %8, %cst_6 [0] : vector<64x128xf32> to vector<128xf32>
    %10 = vector.shape_cast %9 : vector<128xf32> to vector<1x128xf32>
    %cst_7 = arith.constant 0.000000e+00 : f32
    %11 = vector.broadcast %cst_7 : f32 to vector<6x128xf32>
    %12 = tpu.concatenate %7, %10, %11 in 0 : vector<1x128xf32>, vector<1x128xf32>, vector<6x128xf32> -> vector<8x128xf32>
    %c0_8 = arith.constant 0 : index
    %c0_9 = arith.constant 0 : index
    %c0_10 = arith.constant 0 : index
    %13 = vector.load %arg4[%c0_8, %c0_9, %c0_10] : memref<1x8x128xf32, #tpu.memory_space<vmem>>, vector<1x8x128xf32>
    %14 = vector.shape_cast %13 : vector<1x8x128xf32> to vector<8x128xf32>
    %15 = vector.shape_cast %12 : vector<8x128xf32> to vector<1x8x128xf32>
    tpu.vector_store %arg4[%c0_8, %c0_9, %c0_10], %15 {strides = array<i32>} : memref<1x8x128xf32, #tpu.memory_space<vmem>>, vector<1x8x128xf32>,
    return
  }
  func.func @transform_0(%arg0: i32) -> (i32, i32) {
    %c4_i32 = arith.constant 4 : i32
    %0 = arith.muli %arg0, %c4_i32 : i32
    %c0_i32 = arith.constant 0 : i32
    %c0_i32_0 = arith.constant 0 : i32
    return %0, %c0_i32 : i32, i32
  }
  func.func @transform_1(%arg0: i32) -> (i32, i32) {
    %c0_i32 = arith.constant 0 : i32
    %c0_i32_0 = arith.constant 0 : i32
    %c0_i32_1 = arith.constant 0 : i32
    return %c0_i32, %c0_i32_0 : i32, i32
  }
  func.func @transform_2(%arg0: i32) -> (i32, i32) {
    %c0_i32 = arith.constant 0 : i32
    %c0_i32_0 = arith.constant 0 : i32
    return %arg0, %c0_i32 : i32, i32
  }
  func.func @transform_3(%arg0: i32) -> (i32, i32, i32) {
    %c0_i32 = arith.constant 0 : i32
    %c0_i32_0 = arith.constant 0 : i32
    %c0_i32_1 = arith.constant 0 : i32
    return %arg0, %c0_i32, %c0_i32_0 : i32, i32, i32
  }
}

module attributes {stable_mosaic.version = 11 : i64} {
  func.func @_matmul_stats_kernel(%arg0: i32, %arg1: memref<256x8xf32, #tpu.memory_space<vmem>>, %arg2: memref<8x128xbf16, #tpu.memory_space<vmem>>, %arg3: memref<256x128xbf16, #tpu.memory_space<vmem>>, %arg4: memref<1x8x128xf32, #tpu.memory_space<vmem>>) attributes {dimension_semantics = [#tpu.dimension_semantics<parallel>], iteration_bounds = array<i64: 2>, scalar_prefetch = 0 : i64, scratch_operands = 0 : i64, tpu.core_type = #tpu.core_type<tc>, window_params = [{transform_indices = @transform_0, window_bounds = array<i64: 256, 8>}, {pipeline_mode = #tpu.pipeline_mode<synchronous>, transform_indices = @transform_1, window_bounds = array<i64: 8, 128>}, {transform_indices = @transform_2, window_bounds = array<i64: 256, 128>}, {transform_indices = @transform_3, window_bounds = array<i64: 1, 8, 128>}]} {
    %c0 = arith.constant 0 : index
    %c0_0 = arith.constant 0 : index
    %0 = vector.load %arg1[%c0, %c0_0] : memref<256x8xf32, #tpu.memory_space<vmem>>, vector<256x8xf32>
    %1 = arith.truncf %0 : vector<256x8xf32> to vector<256x8xbf16>
    %c0_1 = arith.constant 0 : index
    %c0_2 = arith.constant 0 : index
    %2 = vector.load %arg2[%c0_1, %c0_2] : memref<8x128xbf16, #tpu.memory_space<vmem>>, vector<8x128xbf16>
    %cst = arith.constant dense<0.000000e+00> : vector<256x128xf32>
    %3 = tpu.matmul %1, %2, %cst {dimension_numbers = #tpu.dot_dimension_numbers<[1], [0], [0], [1], [0, 0, 1, 1], [], []>} : vector<256x8xbf16>, vector<8x128xbf16>, vector<256x128xf32> -> vector<256x128xf32>
    %4 = arith.truncf %3 : vector<256x128xf32> to vector<256x128xbf16>
    %c0_3 = arith.constant 0 : index
    %c0_4 = arith.constant 0 : index
    %5 = vector.load %arg3[%c0_3, %c0_4] : memref<256x128xbf16, #tpu.memory_space<vmem>>, vector<256x128xbf16>
    tpu.vector_store %arg3[%c0_3, %c0_4], %4 {strides = array<i32>} : memref<256x128xbf16, #tpu.memory_space<vmem>>, vector<256x128xbf16>,
    %cst_5 = arith.constant dense<0.000000e+00> : vector<128xf32>
    %6 = vector.multi_reduction <add>, %3, %cst_5 [0] : vector<256x128xf32> to vector<128xf32>
    %7 = vector.shape_cast %6 : vector<128xf32> to vector<1x128xf32>
    %8 = arith.mulf %3, %3 : vector<256x128xf32>
    %cst_6 = arith.constant dense<0.000000e+00> : vector<128xf32>
    %9 = vector.multi_reduction <add>, %8, %cst_6 [0] : vector<256x128xf32> to vector<128xf32>
    %10 = vector.shape_cast %9 : vector<128xf32> to vector<1x128xf32>
    %cst_7 = arith.constant 0.000000e+00 : f32
    %11 = vector.broadcast %cst_7 : f32 to vector<6x128xf32>
    %12 = tpu.concatenate %7, %10, %11 in 0 : vector<1x128xf32>, vector<1x128xf32>, vector<6x128xf32> -> vector<8x128xf32>
    %c0_8 = arith.constant 0 : index
    %c0_9 = arith.constant 0 : index
    %c0_10 = arith.constant 0 : index
    %13 = vector.load %arg4[%c0_8, %c0_9, %c0_10] : memref<1x8x128xf32, #tpu.memory_space<vmem>>, vector<1x8x128xf32>
    %14 = vector.shape_cast %13 : vector<1x8x128xf32> to vector<8x128xf32>
    %15 = vector.shape_cast %12 : vector<8x128xf32> to vector<1x8x128xf32>
    tpu.vector_store %arg4[%c0_8, %c0_9, %c0_10], %15 {strides = array<i32>} : memref<1x8x128xf32, #tpu.memory_space<vmem>>, vector<1x8x128xf32>,
    return
  }
  func.func @transform_0(%arg0: i32) -> (i32, i32) {
    %c0_i32 = arith.constant 0 : i32
    %c0_i32_0 = arith.constant 0 : i32
    return %arg0, %c0_i32 : i32, i32
  }
  func.func @transform_1(%arg0: i32) -> (i32, i32) {
    %c0_i32 = arith.constant 0 : i32
    %c0_i32_0 = arith.constant 0 : i32
    %c0_i32_1 = arith.constant 0 : i32
    return %c0_i32, %c0_i32_0 : i32, i32
  }
  func.func @transform_2(%arg0: i32) -> (i32, i32) {
    %c0_i32 = arith.constant 0 : i32
    %c0_i32_0 = arith.constant 0 : i32
    return %arg0, %c0_i32 : i32, i32
  }
  func.func @transform_3(%arg0: i32) -> (i32, i32, i32) {
    %c0_i32 = arith.constant 0 : i32
    %c0_i32_0 = arith.constant 0 : i32
    %c0_i32_1 = arith.constant 0 : i32
    return %arg0, %c0_i32, %c0_i32_0 : i32, i32, i32
  }
}

module attributes {stable_mosaic.version = 11 : i64} {
  func.func @_bnrelu_matmul_stats_kernel(%arg0: i32, %arg1: memref<128x128xbf16, #tpu.memory_space<vmem>>, %arg2: memref<1x128xf32, #tpu.memory_space<vmem>>, %arg3: memref<1x128xf32, #tpu.memory_space<vmem>>, %arg4: memref<128x128xbf16, #tpu.memory_space<vmem>>, %arg5: memref<128x128xbf16, #tpu.memory_space<vmem>>, %arg6: memref<1x8x128xf32, #tpu.memory_space<vmem>>) attributes {dimension_semantics = [#tpu.dimension_semantics<parallel>], iteration_bounds = array<i64: 1>, scalar_prefetch = 0 : i64, scratch_operands = 0 : i64, tpu.core_type = #tpu.core_type<tc>, window_params = [{transform_indices = @transform_0, window_bounds = array<i64: 128, 128>}, {pipeline_mode = #tpu.pipeline_mode<synchronous>, transform_indices = @transform_1, window_bounds = array<i64: 1, 128>}, {pipeline_mode = #tpu.pipeline_mode<synchronous>, transform_indices = @transform_2, window_bounds = array<i64: 1, 128>}, {pipeline_mode = #tpu.pipeline_mode<synchronous>, transform_indices = @transform_3, window_bounds = array<i64: 128, 128>}, {transform_indices = @transform_4, window_bounds = array<i64: 128, 128>}, {transform_indices = @transform_5, window_bounds = array<i64: 1, 8, 128>}]} {
    %c0 = arith.constant 0 : index
    %c0_0 = arith.constant 0 : index
    %0 = vector.load %arg1[%c0, %c0_0] : memref<128x128xbf16, #tpu.memory_space<vmem>>, vector<128x128xbf16>
    %1 = arith.extf %0 : vector<128x128xbf16> to vector<128x128xf32>
    %c0_1 = arith.constant 0 : index
    %c0_2 = arith.constant 0 : index
    %2 = vector.load %arg2[%c0_1, %c0_2] : memref<1x128xf32, #tpu.memory_space<vmem>>, vector<1x128xf32>
    %3 = vector.broadcast %2 : vector<1x128xf32> to vector<128x128xf32>
    %4 = arith.mulf %1, %3 : vector<128x128xf32>
    %c0_3 = arith.constant 0 : index
    %c0_4 = arith.constant 0 : index
    %5 = vector.load %arg3[%c0_3, %c0_4] : memref<1x128xf32, #tpu.memory_space<vmem>>, vector<1x128xf32>
    %6 = vector.broadcast %5 : vector<1x128xf32> to vector<128x128xf32>
    %7 = arith.addf %4, %6 : vector<128x128xf32>
    %cst = arith.constant 0.000000e+00 : f32
    %8 = vector.broadcast %cst : f32 to vector<128x128xf32>
    %9 = arith.maximumf %7, %8 : vector<128x128xf32>
    %10 = arith.truncf %9 : vector<128x128xf32> to vector<128x128xbf16>
    %c0_5 = arith.constant 0 : index
    %c0_6 = arith.constant 0 : index
    %11 = vector.load %arg4[%c0_5, %c0_6] : memref<128x128xbf16, #tpu.memory_space<vmem>>, vector<128x128xbf16>
    %cst_7 = arith.constant dense<0.000000e+00> : vector<128x128xf32>
    %12 = tpu.matmul %10, %11, %cst_7 {dimension_numbers = #tpu.dot_dimension_numbers<[1], [0], [0], [1], [0, 0, 1, 1], [], []>} : vector<128x128xbf16>, vector<128x128xbf16>, vector<128x128xf32> -> vector<128x128xf32>
    %13 = arith.truncf %12 : vector<128x128xf32> to vector<128x128xbf16>
    %c0_8 = arith.constant 0 : index
    %c0_9 = arith.constant 0 : index
    %14 = vector.load %arg5[%c0_8, %c0_9] : memref<128x128xbf16, #tpu.memory_space<vmem>>, vector<128x128xbf16>
    tpu.vector_store %arg5[%c0_8, %c0_9], %13 {strides = array<i32>} : memref<128x128xbf16, #tpu.memory_space<vmem>>, vector<128x128xbf16>,
    %cst_10 = arith.constant dense<0.000000e+00> : vector<128xf32>
    %15 = vector.multi_reduction <add>, %12, %cst_10 [0] : vector<128x128xf32> to vector<128xf32>
    %16 = vector.shape_cast %15 : vector<128xf32> to vector<1x128xf32>
    %17 = arith.mulf %12, %12 : vector<128x128xf32>
    %cst_11 = arith.constant dense<0.000000e+00> : vector<128xf32>
    %18 = vector.multi_reduction <add>, %17, %cst_11 [0] : vector<128x128xf32> to vector<128xf32>
    %19 = vector.shape_cast %18 : vector<128xf32> to vector<1x128xf32>
    %cst_12 = arith.constant 0.000000e+00 : f32
    %20 = vector.broadcast %cst_12 : f32 to vector<6x128xf32>
    %21 = tpu.concatenate %16, %19, %20 in 0 : vector<1x128xf32>, vector<1x128xf32>, vector<6x128xf32> -> vector<8x128xf32>
    %c0_13 = arith.constant 0 : index
    %c0_14 = arith.constant 0 : index
    %c0_15 = arith.constant 0 : index
    %22 = vector.load %arg6[%c0_13, %c0_14, %c0_15] : memref<1x8x128xf32, #tpu.memory_space<vmem>>, vector<1x8x128xf32>
    %23 = vector.shape_cast %22 : vector<1x8x128xf32> to vector<8x128xf32>
    %24 = vector.shape_cast %21 : vector<8x128xf32> to vector<1x8x128xf32>
    tpu.vector_store %arg6[%c0_13, %c0_14, %c0_15], %24 {strides = array<i32>} : memref<1x8x128xf32, #tpu.memory_space<vmem>>, vector<1x8x128xf32>,
    return
  }
  func.func @transform_0(%arg0: i32) -> (i32, i32) {
    %c0_i32 = arith.constant 0 : i32
    %c0_i32_0 = arith.constant 0 : i32
    return %arg0, %c0_i32 : i32, i32
  }
  func.func @transform_1(%arg0: i32) -> (i32, i32) {
    %c0_i32 = arith.constant 0 : i32
    %c0_i32_0 = arith.constant 0 : i32
    %c0_i32_1 = arith.constant 0 : i32
    return %c0_i32, %c0_i32_0 : i32, i32
  }
  func.func @transform_2(%arg0: i32) -> (i32, i32) {
    %c0_i32 = arith.constant 0 : i32
    %c0_i32_0 = arith.constant 0 : i32
    %c0_i32_1 = arith.constant 0 : i32
    return %c0_i32, %c0_i32_0 : i32, i32
  }
  func.func @transform_3(%arg0: i32) -> (i32, i32) {
    %c0_i32 = arith.constant 0 : i32
    %c0_i32_0 = arith.constant 0 : i32
    %c0_i32_1 = arith.constant 0 : i32
    return %c0_i32, %c0_i32_0 : i32, i32
  }
  func.func @transform_4(%arg0: i32) -> (i32, i32) {
    %c0_i32 = arith.constant 0 : i32
    %c0_i32_0 = arith.constant 0 : i32
    return %arg0, %c0_i32 : i32, i32
  }
  func.func @transform_5(%arg0: i32) -> (i32, i32, i32) {
    %c0_i32 = arith.constant 0 : i32
    %c0_i32_0 = arith.constant 0 : i32
    %c0_i32_1 = arith.constant 0 : i32
    return %arg0, %c0_i32, %c0_i32_0 : i32, i32, i32
  }
}

module attributes {stable_mosaic.version = 11 : i64} {
  func.func @_residual_proj_kernel(%arg0: i32, %arg1: memref<128x128xbf16, #tpu.memory_space<vmem>>, %arg2: memref<1x128xf32, #tpu.memory_space<vmem>>, %arg3: memref<1x128xf32, #tpu.memory_space<vmem>>, %arg4: memref<128x128xbf16, #tpu.memory_space<vmem>>, %arg5: memref<1x128xf32, #tpu.memory_space<vmem>>, %arg6: memref<1x128xf32, #tpu.memory_space<vmem>>, %arg7: memref<128x128xf32, #tpu.memory_space<vmem>>) attributes {dimension_semantics = [#tpu.dimension_semantics<parallel>], iteration_bounds = array<i64: 1>, scalar_prefetch = 0 : i64, scratch_operands = 0 : i64, tpu.core_type = #tpu.core_type<tc>, window_params = [{transform_indices = @transform_0, window_bounds = array<i64: 128, 128>}, {pipeline_mode = #tpu.pipeline_mode<synchronous>, transform_indices = @transform_1, window_bounds = array<i64: 1, 128>}, {pipeline_mode = #tpu.pipeline_mode<synchronous>, transform_indices = @transform_2, window_bounds = array<i64: 1, 128>}, {transform_indices = @transform_3, window_bounds = array<i64: 128, 128>}, {pipeline_mode = #tpu.pipeline_mode<synchronous>, transform_indices = @transform_4, window_bounds = array<i64: 1, 128>}, {pipeline_mode = #tpu.pipeline_mode<synchronous>, transform_indices = @transform_5, window_bounds = array<i64: 1, 128>}, {transform_indices = @transform_6, window_bounds = array<i64: 128, 128>}]} {
    %c0 = arith.constant 0 : index
    %c0_0 = arith.constant 0 : index
    %0 = vector.load %arg1[%c0, %c0_0] : memref<128x128xbf16, #tpu.memory_space<vmem>>, vector<128x128xbf16>
    %1 = arith.extf %0 : vector<128x128xbf16> to vector<128x128xf32>
    %c0_1 = arith.constant 0 : index
    %c0_2 = arith.constant 0 : index
    %2 = vector.load %arg2[%c0_1, %c0_2] : memref<1x128xf32, #tpu.memory_space<vmem>>, vector<1x128xf32>
    %3 = vector.broadcast %2 : vector<1x128xf32> to vector<128x128xf32>
    %4 = arith.mulf %1, %3 : vector<128x128xf32>
    %c0_3 = arith.constant 0 : index
    %c0_4 = arith.constant 0 : index
    %5 = vector.load %arg3[%c0_3, %c0_4] : memref<1x128xf32, #tpu.memory_space<vmem>>, vector<1x128xf32>
    %6 = vector.broadcast %5 : vector<1x128xf32> to vector<128x128xf32>
    %7 = arith.addf %4, %6 : vector<128x128xf32>
    %c0_5 = arith.constant 0 : index
    %c0_6 = arith.constant 0 : index
    %8 = vector.load %arg4[%c0_5, %c0_6] : memref<128x128xbf16, #tpu.memory_space<vmem>>, vector<128x128xbf16>
    %9 = arith.extf %8 : vector<128x128xbf16> to vector<128x128xf32>
    %c0_7 = arith.constant 0 : index
    %c0_8 = arith.constant 0 : index
    %10 = vector.load %arg5[%c0_7, %c0_8] : memref<1x128xf32, #tpu.memory_space<vmem>>, vector<1x128xf32>
    %11 = vector.broadcast %10 : vector<1x128xf32> to vector<128x128xf32>
    %12 = arith.mulf %9, %11 : vector<128x128xf32>
    %c0_9 = arith.constant 0 : index
    %c0_10 = arith.constant 0 : index
    %13 = vector.load %arg6[%c0_9, %c0_10] : memref<1x128xf32, #tpu.memory_space<vmem>>, vector<1x128xf32>
    %14 = vector.broadcast %13 : vector<1x128xf32> to vector<128x128xf32>
    %15 = arith.addf %12, %14 : vector<128x128xf32>
    %16 = arith.addf %7, %15 : vector<128x128xf32>
    %cst = arith.constant 0.000000e+00 : f32
    %17 = vector.broadcast %cst : f32 to vector<128x128xf32>
    %18 = arith.maximumf %16, %17 : vector<128x128xf32>
    %c0_11 = arith.constant 0 : index
    %c0_12 = arith.constant 0 : index
    %19 = vector.load %arg7[%c0_11, %c0_12] : memref<128x128xf32, #tpu.memory_space<vmem>>, vector<128x128xf32>
    tpu.vector_store %arg7[%c0_11, %c0_12], %18 {strides = array<i32>} : memref<128x128xf32, #tpu.memory_space<vmem>>, vector<128x128xf32>,
    return
  }
  func.func @transform_0(%arg0: i32) -> (i32, i32) {
    %c0_i32 = arith.constant 0 : i32
    %c0_i32_0 = arith.constant 0 : i32
    return %arg0, %c0_i32 : i32, i32
  }
  func.func @transform_1(%arg0: i32) -> (i32, i32) {
    %c0_i32 = arith.constant 0 : i32
    %c0_i32_0 = arith.constant 0 : i32
    %c0_i32_1 = arith.constant 0 : i32
    return %c0_i32, %c0_i32_0 : i32, i32
  }
  func.func @transform_2(%arg0: i32) -> (i32, i32) {
    %c0_i32 = arith.constant 0 : i32
    %c0_i32_0 = arith.constant 0 : i32
    %c0_i32_1 = arith.constant 0 : i32
    return %c0_i32, %c0_i32_0 : i32, i32
  }
  func.func @transform_3(%arg0: i32) -> (i32, i32) {
    %c0_i32 = arith.constant 0 : i32
    %c0_i32_0 = arith.constant 0 : i32
    return %arg0, %c0_i32 : i32, i32
  }
  func.func @transform_4(%arg0: i32) -> (i32, i32) {
    %c0_i32 = arith.constant 0 : i32
    %c0_i32_0 = arith.constant 0 : i32
    %c0_i32_1 = arith.constant 0 : i32
    return %c0_i32, %c0_i32_0 : i32, i32
  }
  func.func @transform_5(%arg0: i32) -> (i32, i32) {
    %c0_i32 = arith.constant 0 : i32
    %c0_i32_0 = arith.constant 0 : i32
    %c0_i32_1 = arith.constant 0 : i32
    return %c0_i32, %c0_i32_0 : i32, i32
  }
  func.func @transform_6(%arg0: i32) -> (i32, i32) {
    %c0_i32 = arith.constant 0 : i32
    %c0_i32_0 = arith.constant 0 : i32
    return %arg0, %c0_i32 : i32, i32
  }
}

</mosaic_0001>

<bundles_post_ra>
// kernel: bottleneck_block_forward.8
= control target key start
LH: loop header
LB: loop body
LE: loop exit
PB: predicated region body
PF: predicated region fallthrough
CT: control target
= control target key end

     0   :  { %s570_s12 = smov 0   ;;  %s599_s0 = inlined_call_operand.vmem [shape: f32[512,8], index: 0, kind: input, shape index: {}]   ;;  %s600_s1 = inlined_call_operand.vmem [shape: bf16[8,128], index: 1, kind: input, shape index: {}]   ;;  %s601_s2 = inlined_call_operand.vmem [shape: bf16[128,128], index: 2, kind: output, shape index: {0}]   ;;  %s602_s3 = inlined_call_operand.vmem [shape: f32[2,8,128], index: 3, kind: output, shape index: {1}]  }
   0x1 LB: > { %s576_s13 = sadd.s32 4294967295, %s548_s12   ;;  %p460_p0 = scmp.ge.s32.totalorder %s548_s12, 1  ;;  %s548_s12 = sphi %s570_s12, %s14_s12  }
   0x2   : > { %p145_p1 = scmp.lt.s32.totalorder %s548_s12, 3 }
   0x4   : > { %p146_p2 = pnand %p460_p0, %p145_p1 }
   0x5   : > { %v205_v0 = vld [vmem:[%s600_s1] sm:$0xf] (!%p146_p2)  ;;  %vm219_vm0 = vcmask (!%p146_p2), 1043456   ;;  %s483_s16 = sshll.u32 (!%p146_p2), %s576_s13, 5  ;;  %vm206_vm1 = vcmask (!%p146_p2), 64512   ;;  %s464_s21 = sshll.u32 (!%p146_p2), %s576_s13, 3 }
   0x6   : > { %149 = sbr.rel (%p146_p2) target bundleno = 266 (0x10a), region = 28  ;;  %532 = vmatprep.subr.msk.bf16.mxu0 (!%p146_p2), %vm219_vm0, %v205_v0  ;;  %v221_v1 = vsel (!%p146_p2), %vm219_vm0, %v205_v0, 0  ;;  %p176_p3 = scmp.lt.s32.totalorder (!%p146_p2), %s483_s16, 63  ;;  %533 = vmatprep.subr.msk.bf16.mxu1 (!%p146_p2), %vm219_vm0, %v205_v0  ;;  %vm362_vm2 = vcmask (!%p146_p2), 1040384   ;;  %vm364_vm3 = vcmask (!%p146_p2), 1041408  }
   0x7   : > { %521 = vmatpush3.bf16.msra.mxu0 (!%p146_p2), %v221_v1  ;;  %531 = vmatpush3.bf16.msra.mxu1 (!%p146_p2), %v221_v1  ;;  %p183_p4 = scmp.lt.s32.totalorder (!%p146_p2), %s464_s21, 15  ;;  %p188_p5 = scmp.lt.s32.totalorder (!%p146_p2), %s576_s13, 1 }
   0xd   : > { %s604_s16 = smov (!%p176_p3, %s483_s16), 63  ;;  %s606_s21 = smov (!%p183_p4, %s464_s21), 15 }
   0xe   : > { %s463_s17 = sshll.u32 %s604_s16, 3  ;;  %s465_s22 = sshll.u32 %s606_s21, 2 }
   0xf   : > { %s179_s20 = scalar_lea.vmem %s599_s0, %s463_s17  ;;  %s186_s25 = scalar_lea.vmem %s601_s2, %s465_s22 }
  0x10   : > { %v193_v2 = vld [vmem:[%s179_s20] sm:$0xff]  ;;  %v194_v3 = vld [vmem:[%s179_s20 + $0x8] sm:$0xff]  ;;  %v195_v4 = vld [vmem:[%s179_s20 + $0x10] sm:$0xff]  ;;  %s608_s13 = smov (!%p188_p5, %s576_s13), 1 }
  0x11   : > { %v201_v5 = vpack.c.bf16 %v194_v3, %v193_v2  ;;  %v196_v6 = vld [vmem:[%s179_s20 + $0x18] sm:$0xff]  ;;  %v197_v7 = vld [vmem:[%s179_s20 + $0x20] sm:$0xff]  ;;  %v198_v8 = vld [vmem:[%s179_s20 + $0x28] sm:$0xff]  ;;  %s466_s26 = sshll.u32 %s608_s13, 3 }
  0x12   : > { %v202_v9 = vpack.c.bf16 %v196_v6, %v195_v4  ;;  %v203_v10 = vpack.c.bf16 %v198_v8, %v197_v7  ;;  %v199_v11 = vld [vmem:[%s179_s20 + $0x30] sm:$0xff]  ;;  %v200_v12 = vld [vmem:[%s179_s20 + $0x38] sm:$0xff]  ;;  %s191_s29 = scalar_lea.vmem %s602_s3, %s466_s26 }
  0x13   : > { %522 = vmatprep.mubr.msk.bf16.mxu0 %vm206_vm1, %v201_v5  ;;  %v204_v13 = vpack.c.bf16 %v200_v12, %v199_v11 }
  0x14   : > { %523 = vmatmul.mubr.msk.bf16.vlgmr.msra.gmra.mrb[0].mxu0 %vm206_vm1, %v202_v9  ;;  %526 = vmatprep.mubr.msk.bf16.mxu1 %vm206_vm1, %v203_v10 }
  0x15   : > { %527 = vmatmul.mubr.msk.bf16.vlgmr.msra.gmra.mrb[0].mxu1 %vm206_vm1, %v204_v13 }
  0xe7   : > { %v524_v14 = vpop.f32.mrb[0].mxu0 }
  0xe8   : > { %v257_v15 = vpop.f32.mrb[1].mxu0  ;;  %v528_v16 = vpop.f32.mrb[0].mxu1  ;;  %v343_v29 = vmul.f32 %v524_v14, %v524_v14 }
  0xe9   : > { %v525_v17 = vpop.f32.mrb[2].mxu0  ;;  %v273_v18 = vpop.f32.mrb[1].mxu1  ;;  %v341_v19 = vmul.f32 %v257_v15, %v257_v15  ;;  %v347_v41 = vmul.f32 %v528_v16, %v528_v16 }
  0xea   : > { %v500_v20 = vpack.c.bf16 %v525_v17, %v524_v14  ;;  %v260_v21 = vpop.f32.mrb[3].mxu0  ;;  %v529_v22 = vpop.f32.mrb[2].mxu1  ;;  %v344_v32 = vmul.f32 %v525_v17, %v525_v17  ;;  %v345_v35 = vmul.f32 %v273_v18, %v273_v18 }
  0xeb   : > { %v495_v23 = vpack.c.bf16 %v260_v21, %v257_v15  ;;  %v328_v24 = vadd.f32 %v260_v21, %v257_v15  ;;  %v342_v25 = vmul.f32 %v260_v21, %v260_v21  ;;  %v510_v26 = vpack.c.bf16 %v529_v22, %v528_v16  ;;  %v276_v27 = vpop.f32.mrb[3].mxu1 }
  0xec   : > { %512 = vst [vmem:[%s186_s25 + $0x8] sm:$0xff] %v500_v20   ;;  %v505_v28 = vpack.c.bf16 %v276_v27, %v273_v18  ;;  %v346_v40 = vmul.f32 %v276_v27, %v276_v27  ;;  %v348_v44 = vmul.f32 %v529_v22, %v529_v22 }
  0xed   : > { %496 = vst [vmem:[%s186_s25] sm:$0xff] %v495_v23   ;;  %v329_v30 = vadd.f32 %v524_v14, %v328_v24  ;;  %v349_v31 = vadd.f32 %v342_v25, %v341_v19  ;;  %514 = vst [vmem:[%s186_s25 + $0x18] sm:$0xff] %v510_v26  }
  0xee   : > { %513 = vst [vmem:[%s186_s25 + $0x10] sm:$0xff] %v505_v28  }
  0xef   : > { %v350_v33 = vadd.f32 %v349_v31, %v343_v29  ;;  %v330_v34 = vadd.f32 %v525_v17, %v329_v30 }
  0xf1   : > { %v331_v36 = vadd.f32 %v330_v34, %v273_v18  ;;  %v351_v37 = vadd.f32 %v350_v33, %v344_v32 }
  0xf3   : > { %v352_v38 = vadd.f32 %v351_v37, %v345_v35  ;;  %v332_v39 = vadd.f32 %v331_v36, %v276_v27 }
  0xf5   : > { %v333_v42 = vadd.f32 %v528_v16, %v332_v39  ;;  %v353_v43 = vadd.f32 %v352_v38, %v346_v40 }
  0xf7   : > { %v334_v45 = vadd.f32 %v529_v22, %v333_v42  ;;  %v354_v46 = vadd.f32 %v353_v43, %v347_v41 }
  0xf9   : > { %v335_v47 = vrot.slane %v334_v45, 4  ;;  %v355_v48 = vadd.f32 %v354_v46, %v348_v44 }
  0xfb   : > { %v336_v49 = vadd.f32 %v335_v47, %v334_v45  ;;  %v356_v50 = vrot.slane %v355_v48, 4 }
  0xfd   : > { %v337_v51 = vrot.slane %v336_v49, 2  ;;  %v357_v52 = vadd.f32 %v356_v50, %v355_v48 }
  0xff   : > { %v338_v53 = vadd.f32 %v337_v51, %v336_v49  ;;  %v358_v54 = vrot.slane %v357_v52, 2 }
 0x101   : > { %v339_v55 = vrot.slane %v338_v53, 1  ;;  %v359_v56 = vadd.f32 %v358_v54, %v357_v52 }
 0x103   : > { %v360_v57 = vrot.slane %v359_v56, 1  ;;  %v340_v58 = vadd.f32 %v339_v55, %v338_v53 }
 0x105   : > { %v361_v59 = vadd.f32 %v360_v57, %v359_v56 }
 0x107   : > { %v363_v60 = vsel %vm362_vm2, %v340_v58, %v361_v59 }
 0x108   : > { %v365_v61 = vsel %vm364_vm3, %v363_v60, 0.0 }
 0x109   : > { %366 = vst [vmem:[%s191_s29] sm:$0xff] %v365_v61 }
 0x10a PF: > { %s14_s12 = sadd.s32 1, %s548_s12  }
 0x10b   : > { %p11_p6 = scmp.ge.s32.totalorder %s14_s12, 4  }
 0x10d   :  { %13 = sbr.rel (!%p11_p6) target bundleno = 1 (0x1), region = 70 }

// kernel: bottleneck_block_forward.5
= control target key start
LH: loop header
LB: loop body
LE: loop exit
PB: predicated region body
PF: predicated region fallthrough
CT: control target
= control target key end

     0   :  { %s1085_s12 = smov 0   ;;  %s1251_s0 = inlined_call_operand.vmem [shape: f32[512,8], index: 0, kind: input, shape index: {}]   ;;  %s1252_s1 = inlined_call_operand.vmem [shape: bf16[8,128], index: 1, kind: input, shape index: {}]   ;;  %s1253_s2 = inlined_call_operand.vmem [shape: bf16[512,128], index: 2, kind: output, shape index: {0}]   ;;  %s1254_s3 = inlined_call_operand.vmem [shape: f32[2,8,128], index: 3, kind: output, shape index: {1}]  }
   0x1 LB: > { %s1091_s13 = sadd.s32 4294967295, %s1063_s12   ;;  %p811_p0 = scmp.ge.s32.totalorder %s1063_s12, 1  ;;  %s1063_s12 = sphi %s1085_s12, %s14_s12  }
   0x2   : > { %p141_p1 = scmp.lt.s32.totalorder %s1063_s12, 3 }
   0x4   : > { %p142_p2 = pnand %p811_p0, %p141_p1 }
   0x5   : > { %v234_v0 = vld [vmem:[%s1252_s1] sm:$0xf] (!%p142_p2)  ;;  %vm284_vm0 = vcmask (!%p142_p2), 1043456   ;;  %s812_s16 = sshll.u32 (!%p142_p2), %s1091_s13, 5  ;;  %vm235_vm1 = vcmask (!%p142_p2), 64512   ;;  %p181_p4 = scmp.lt.s32.totalorder (!%p142_p2), %s1091_s13, 1 }
   0x6   : > { %145 = sbr.rel (%p142_p2) target bundleno = 314 (0x13a), region = 28  ;;  %1047 = vmatprep.subr.msk.bf16.mxu0 (!%p142_p2), %vm284_vm0, %v234_v0  ;;  %v286_v1 = vsel (!%p142_p2), %vm284_vm0, %v234_v0, 0  ;;  %p170_p3 = scmp.lt.s32.totalorder (!%p142_p2), %s812_s16, 63  ;;  %1048 = vmatprep.subr.msk.bf16.mxu1 (!%p142_p2), %vm284_vm0, %v234_v0  ;;  %vm715_vm2 = vcmask (!%p142_p2), 1040384   ;;  %vm717_vm3 = vcmask (!%p142_p2), 1041408  }
   0x7   : > { %1012 = vmatpush3.bf16.msra.mxu0 (!%p142_p2), %v286_v1  ;;  %1046 = vmatpush3.bf16.msra.mxu1 (!%p142_p2), %v286_v1 }
   0xd   : > { %s1256_s16 = smov (!%p170_p3, %s812_s16), 63  ;;  %s1258_s13 = smov (!%p181_p4, %s1091_s13), 1 }
   0xe   : > { %s813_s17 = sshll.u32 %s1256_s16, 3  ;;  %s815_s21 = sshll.u32 %s1256_s16, 2 }
   0xf   : > { %s1105_s20 = scalar_lea.vmem %s1251_s0, %s813_s17  ;;  %s1159_s24 = scalar_lea.vmem %s1253_s2, %s815_s21 }
  0x10   : > { %v186_v2 = vld [vmem:[%s1105_s20] sm:$0xff]  ;;  %v187_v3 = vld [vmem:[%s1105_s20 + $0x8] sm:$0xff]  ;;  %v188_v4 = vld [vmem:[%s1105_s20 + $0x10] sm:$0xff]  ;;  %s816_s25 = sshll.u32 %s1258_s13, 3 }
  0x11   : > { %v218_v5 = vpack.c.bf16 %v187_v3, %v186_v2  ;;  %v189_v6 = vld [vmem:[%s1105_s20 + $0x18] sm:$0xff]  ;;  %v190_v7 = vld [vmem:[%s1105_s20 + $0x20] sm:$0xff]  ;;  %v191_v8 = vld [vmem:[%s1105_s20 + $0x28] sm:$0xff]  ;;  %s184_s28 = scalar_lea.vmem %s1254_s3, %s816_s25 }
  0x12   : > { %v219_v9 = vpack.c.bf16 %v189_v6, %v188_v4  ;;  %v220_v10 = vpack.c.bf16 %v191_v8, %v190_v7  ;;  %v192_v11 = vld [vmem:[%s1105_s20 + $0x30] sm:$0xff]  ;;  %v193_v12 = vld [vmem:[%s1105_s20 + $0x38] sm:$0xff]  ;;  %v194_v13 = vld [vmem:[%s1105_s20 + $0x40] sm:$0xff] }
  0x13   : > { %1013 = vmatprep.mubr.msk.bf16.mxu0 %vm235_vm1, %v218_v5  ;;  %v195_v14 = vld [vmem:[%s1105_s20 + $0x48] sm:$0xff]  ;;  %v202_v15 = vld [vmem:[%s1105_s20 + $0x80] sm:$0xff]  ;;  %v204_v18 = vld [vmem:[%s1105_s20 + $0x90] sm:$0xff]  ;;  %v221_v23 = vpack.c.bf16 %v193_v12, %v192_v11 }
  0x14   : > { %1014 = vmatmul.mubr.msk.bf16.vlgmr.msra.gmra.mrb[0].mxu0 %vm235_vm1, %v219_v9  ;;  %v203_v16 = vld [vmem:[%s1105_s20 + $0x88] sm:$0xff]  ;;  %v205_v19 = vld [vmem:[%s1105_s20 + $0x98] sm:$0xff]  ;;  %v206_v20 = vld [vmem:[%s1105_s20 + $0xa0] sm:$0xff]  ;;  %v222_v25 = vpack.c.bf16 %v195_v14, %v194_v13 }
  0x15   : > { %1017 = vmatprep.mubr.msk.bf16.mxu0 %vm235_vm1, %v220_v10  ;;  %v226_v17 = vpack.c.bf16 %v203_v16, %v202_v15  ;;  %v227_v21 = vpack.c.bf16 %v205_v19, %v204_v18  ;;  %v207_v22 = vld [vmem:[%s1105_s20 + $0xa8] sm:$0xff]  ;;  %v208_v26 = vld [vmem:[%s1105_s20 + $0xb0] sm:$0xff]  ;;  %v209_v27 = vld [vmem:[%s1105_s20 + $0xb8] sm:$0xff] }
  0x16   : > { %v228_v24 = vpack.c.bf16 %v207_v22, %v206_v20  ;;  %v210_v28 = vld [vmem:[%s1105_s20 + $0xc0] sm:$0xff]  ;;  %v211_v29 = vld [vmem:[%s1105_s20 + $0xc8] sm:$0xff]  ;;  %v196_v30 = vld [vmem:[%s1105_s20 + $0x50] sm:$0xff]  ;;  %v229_v32 = vpack.c.bf16 %v209_v27, %v208_v26 }
  0x17   : > { %1029 = vmatprep.mubr.msk.bf16.mxu1 %vm235_vm1, %v226_v17  ;;  %v197_v31 = vld [vmem:[%s1105_s20 + $0x58] sm:$0xff]  ;;  %v198_v33 = vld [vmem:[%s1105_s20 + $0x60] sm:$0xff]  ;;  %v199_v34 = vld [vmem:[%s1105_s20 + $0x68] sm:$0xff]  ;;  %v230_v35 = vpack.c.bf16 %v211_v29, %v210_v28 }
  0x18   : > { %1030 = vmatmul.mubr.msk.bf16.vlgmr.msra.gmra.mrb[0].mxu1 %vm235_vm1, %v227_v21  ;;  %v223_v36 = vpack.c.bf16 %v197_v31, %v196_v30  ;;  %v224_v37 = vpack.c.bf16 %v199_v34, %v198_v33  ;;  %v212_v38 = vld [vmem:[%s1105_s20 + $0xd0] sm:$0xff]  ;;  %v213_v39 = vld [vmem:[%s1105_s20 + $0xd8] sm:$0xff]  ;;  %v214_v40 = vld [vmem:[%s1105_s20 + $0xe0] sm:$0xff] }
  0x19   : > { %1033 = vmatprep.mubr.msk.bf16.mxu1 %vm235_vm1, %v228_v24  ;;  %v215_v41 = vld [vmem:[%s1105_s20 + $0xe8] sm:$0xff]  ;;  %v200_v42 = vld [vmem:[%s1105_s20 + $0x70] sm:$0xff]  ;;  %v201_v43 = vld [vmem:[%s1105_s20 + $0x78] sm:$0xff]  ;;  %v231_v44 = vpack.c.bf16 %v213_v39, %v212_v38 }
  0x1a   : > { %v232_v45 = vpack.c.bf16 %v215_v41, %v214_v40  ;;  %v225_v46 = vpack.c.bf16 %v201_v43, %v200_v42  ;;  %v216_v47 = vld [vmem:[%s1105_s20 + $0xf0] sm:$0xff]  ;;  %v217_v48 = vld [vmem:[%s1105_s20 + $0xf8] sm:$0xff] }
  0x1b   : > { %v233_v49 = vpack.c.bf16 %v217_v48, %v216_v47 }
  0x1c   : > { %1018 = vmatmul.mubr.msk.bf16.gmra.mrb[4].mxu0 %vm235_vm1, %v221_v23 }
  0x1d   : > { %1021 = vmatprep.mubr.msk.bf16.mxu0 %vm235_vm1, %v222_v25 }
  0x20   : > { %1034 = vmatmul.mubr.msk.bf16.gmra.mrb[4].mxu1 %vm235_vm1, %v229_v32 }
  0x21   : > { %1037 = vmatprep.mubr.msk.bf16.mxu1 %vm235_vm1, %v230_v35 }
  0x24   : > { %1022 = vmatmul.mubr.msk.bf16.gmra.mrb[8].mxu0 %vm235_vm1, %v223_v36 }
  0x25   : > { %1025 = vmatprep.mubr.msk.bf16.mxu0 %vm235_vm1, %v224_v37 }
  0x28   : > { %1038 = vmatmul.mubr.msk.bf16.gmra.mrb[8].mxu1 %vm235_vm1, %v231_v44 }
  0x29   : > { %1041 = vmatprep.mubr.msk.bf16.mxu1 %vm235_vm1, %v232_v45 }
  0x2c   : > { %1026 = vmatmul.mubr.msk.bf16.gmra.mrb[12].mxu0 %vm235_vm1, %v225_v46 }
  0x30   : > { %1042 = vmatmul.mubr.msk.bf16.gmra.mrb[12].mxu1 %vm235_vm1, %v233_v49 }
  0xe7   : > { %v1015_v50 = vpop.f32.mrb[0].mxu0 }
  0xe8   : > { %v322_v51 = vpop.f32.mrb[1].mxu0  ;;  %v648_v60 = vmul.f32 %v1015_v50, %v1015_v50 }
  0xe9   : > { %v1016_v52 = vpop.f32.mrb[2].mxu0  ;;  %v646_v55 = vmul.f32 %v322_v51, %v322_v51 }
  0xea   : > { %v907_v53 = vpack.c.bf16 %v1016_v52, %v1015_v50  ;;  %v325_v54 = vpop.f32.mrb[3].mxu0  ;;  %v649_v1 = vmul.f32 %v1016_v52, %v1016_v52 }
  0xeb   : > { %v902_v56 = vpack.c.bf16 %v325_v54, %v322_v51  ;;  %v609_v57 = vadd.f32 %v325_v54, %v322_v51  ;;  %v647_v58 = vmul.f32 %v325_v54, %v325_v54  ;;  %v1162_v59 = vpop.f32.mrb[0].mxu1 }
  0xec   : > { %979 = vst [vmem:[%s1159_s24 + $0x8] sm:$0xff] %v907_v53   ;;  %v1165_v63 = vpop.f32.mrb[1].mxu1 }
  0xed   : > { %903 = vst [vmem:[%s1159_s24] sm:$0xff] %v902_v56   ;;  %v610_v61 = vadd.f32 %v1015_v50, %v609_v57  ;;  %v678_v62 = vadd.f32 %v647_v58, %v646_v55  ;;  %v1167_v0 = vpop.f32.mrb[2].mxu1 }
  0xee   : > { %v947_v5 = vpack.c.bf16 %v1167_v0, %v1162_v59  ;;  %v1171_v6 = vpop.f32.mrb[3].mxu1 }
  0xef   : > { %v679_v2 = vadd.f32 %v678_v62, %v648_v60  ;;  %v1019_v3 = vpop.f32.mrb[4].mxu0  ;;  %v611_v4 = vadd.f32 %v1016_v52, %v610_v61  ;;  %v942_v8 = vpack.c.bf16 %v1171_v6, %v1165_v63 }
  0xf0   : > { %v338_v7 = vpop.f32.mrb[5].mxu0  ;;  %987 = vst [vmem:[%s1159_s24 + $0x48] sm:$0xff] %v947_v5   ;;  %v652_v20 = vmul.f32 %v1019_v3, %v1019_v3 }
  0xf1   : > { %v612_v9 = vadd.f32 %v611_v4, %v338_v7  ;;  %v650_v10 = vmul.f32 %v338_v7, %v338_v7  ;;  %v680_v11 = vadd.f32 %v679_v2, %v649_v1  ;;  %v1020_v12 = vpop.f32.mrb[6].mxu0  ;;  %986 = vst [vmem:[%s1159_s24 + $0x40] sm:$0xff] %v942_v8  }
  0xf2   : > { %v917_v13 = vpack.c.bf16 %v1020_v12, %v1019_v3  ;;  %v341_v14 = vpop.f32.mrb[7].mxu0  ;;  %v653_v25 = vmul.f32 %v1020_v12, %v1020_v12 }
  0xf3   : > { %v681_v15 = vadd.f32 %v680_v11, %v650_v10  ;;  %v912_v16 = vpack.c.bf16 %v341_v14, %v338_v7  ;;  %v613_v17 = vadd.f32 %v612_v9, %v341_v14  ;;  %v651_v18 = vmul.f32 %v341_v14, %v341_v14  ;;  %v1178_v19 = vpop.f32.mrb[4].mxu1 }
  0xf4   : > { %981 = vst [vmem:[%s1159_s24 + $0x18] sm:$0xff] %v917_v13   ;;  %v1181_v23 = vpop.f32.mrb[5].mxu1 }
  0xf5   : > { %980 = vst [vmem:[%s1159_s24 + $0x10] sm:$0xff] %v912_v16   ;;  %v614_v21 = vadd.f32 %v1019_v3, %v613_v17  ;;  %v682_v22 = vadd.f32 %v681_v15, %v651_v18  ;;  %v1183_v24 = vpop.f32.mrb[6].mxu1 }
  0xf6   : > { %v957_v29 = vpack.c.bf16 %v1183_v24, %v1178_v19  ;;  %v1187_v30 = vpop.f32.mrb[7].mxu1 }
  0xf7   : > { %v683_v26 = vadd.f32 %v682_v22, %v652_v20  ;;  %v1023_v27 = vpop.f32.mrb[8].mxu0  ;;  %v615_v28 = vadd.f32 %v1020_v12, %v614_v21  ;;  %v952_v32 = vpack.c.bf16 %v1187_v30, %v1181_v23  ;;  %v662_v12 = vmul.f32 %v1165_v63, %v1165_v63 }
  0xf8   : > { %v354_v31 = vpop.f32.mrb[9].mxu0  ;;  %989 = vst [vmem:[%s1159_s24 + $0x58] sm:$0xff] %v957_v29   ;;  %v656_v44 = vmul.f32 %v1023_v27, %v1023_v27 }
  0xf9   : > { %v616_v33 = vadd.f32 %v615_v28, %v354_v31  ;;  %v654_v34 = vmul.f32 %v354_v31, %v354_v31  ;;  %v684_v35 = vadd.f32 %v683_v26, %v653_v25  ;;  %v1024_v36 = vpop.f32.mrb[10].mxu0  ;;  %988 = vst [vmem:[%s1159_s24 + $0x50] sm:$0xff] %v952_v32   ;;  %v664_v28 = vmul.f32 %v1162_v59, %v1162_v59 }
  0xfa   : > { %v927_v37 = vpack.c.bf16 %v1024_v36, %v1023_v27  ;;  %v357_v38 = vpop.f32.mrb[11].mxu0  ;;  %v657_v49 = vmul.f32 %v1024_v36, %v1024_v36  ;;  %v665_v32 = vmul.f32 %v1167_v0, %v1167_v0 }
  0xfb   : > { %v685_v39 = vadd.f32 %v684_v35, %v654_v34  ;;  %v922_v40 = vpack.c.bf16 %v357_v38, %v354_v31  ;;  %v617_v41 = vadd.f32 %v616_v33, %v357_v38  ;;  %v655_v42 = vmul.f32 %v357_v38, %v357_v38  ;;  %v1194_v43 = vpop.f32.mrb[8].mxu1 }
  0xfc   : > { %983 = vst [vmem:[%s1159_s24 + $0x28] sm:$0xff] %v927_v37   ;;  %v1197_v47 = vpop.f32.mrb[9].mxu1  ;;  %v666_v34 = vmul.f32 %v1181_v23, %v1181_v23  ;;  %v667_v38 = vmul.f32 %v1187_v30, %v1187_v30 }
  0xfd   : > { %982 = vst [vmem:[%s1159_s24 + $0x20] sm:$0xff] %v922_v40   ;;  %v618_v45 = vadd.f32 %v1023_v27, %v617_v41  ;;  %v686_v46 = vadd.f32 %v685_v39, %v655_v42  ;;  %v1199_v48 = vpop.f32.mrb[10].mxu1  ;;  %v663_v27 = vmul.f32 %v1171_v6, %v1171_v6 }
  0xfe   : > { %v967_v53 = vpack.c.bf16 %v1199_v48, %v1194_v43  ;;  %v421_v54 = vpop.f32.mrb[11].mxu1 }
  0xff   : > { %v687_v50 = vadd.f32 %v686_v46, %v656_v44  ;;  %v1027_v51 = vpop.f32.mrb[12].mxu0  ;;  %v619_v52 = vadd.f32 %v1024_v36, %v618_v45  ;;  %v962_v56 = vpack.c.bf16 %v421_v54, %v1197_v47 }
 0x100   : > { %v370_v55 = vpop.f32.mrb[13].mxu0  ;;  %991 = vst [vmem:[%s1159_s24 + $0x68] sm:$0xff] %v967_v53   ;;  %v660_v8 = vmul.f32 %v1027_v51, %v1027_v51 }
 0x101   : > { %v620_v57 = vadd.f32 %v619_v52, %v370_v55  ;;  %v658_v58 = vmul.f32 %v370_v55, %v370_v55  ;;  %v688_v60 = vadd.f32 %v687_v50, %v657_v49  ;;  %v1028_v61 = vpop.f32.mrb[14].mxu0  ;;  %990 = vst [vmem:[%s1159_s24 + $0x60] sm:$0xff] %v962_v56   ;;  %v671_v49 = vmul.f32 %v421_v54, %v421_v54 }
 0x102   : > { %v937_v62 = vpack.c.bf16 %v1028_v61, %v1027_v51  ;;  %v373_v1 = vpop.f32.mrb[15].mxu0  ;;  %v661_v14 = vmul.f32 %v1028_v61, %v1028_v61  ;;  %v672_v50 = vmul.f32 %v1194_v43, %v1194_v43  ;;  %v673_v52 = vmul.f32 %v1199_v48, %v1199_v48 }
 0x103   : > { %v689_v2 = vadd.f32 %v688_v60, %v658_v58  ;;  %v932_v3 = vpack.c.bf16 %v373_v1, %v370_v55  ;;  %v621_v4 = vadd.f32 %v620_v57, %v373_v1  ;;  %v659_v5 = vmul.f32 %v373_v1, %v373_v1  ;;  %v1043_v7 = vpop.f32.mrb[12].mxu1 }
 0x104   : > { %985 = vst [vmem:[%s1159_s24 + $0x38] sm:$0xff] %v937_v62   ;;  %v434_v11 = vpop.f32.mrb[13].mxu1  ;;  %v676_v60 = vmul.f32 %v1043_v7, %v1043_v7 }
 0x105   : > { %984 = vst [vmem:[%s1159_s24 + $0x30] sm:$0xff] %v932_v3   ;;  %v622_v9 = vadd.f32 %v1027_v51, %v621_v4  ;;  %v690_v10 = vadd.f32 %v689_v2, %v659_v5  ;;  %v1044_v13 = vpop.f32.mrb[14].mxu1  ;;  %v674_v55 = vmul.f32 %v434_v11, %v434_v11 }
 0x106   : > { %v977_v17 = vpack.c.bf16 %v1044_v13, %v1043_v7  ;;  %v437_v18 = vpop.f32.mrb[15].mxu1  ;;  %v677_v1 = vmul.f32 %v1044_v13, %v1044_v13 }
 0x107   : > { %v691_v15 = vadd.f32 %v690_v10, %v660_v8  ;;  %v623_v16 = vadd.f32 %v1028_v61, %v622_v9  ;;  %v972_v20 = vpack.c.bf16 %v437_v18, %v434_v11 }
 0x108   : > { %993 = vst [vmem:[%s1159_s24 + $0x78] sm:$0xff] %v977_v17  }
 0x109   : > { %v624_v21 = vadd.f32 %v623_v16, %v1165_v63  ;;  %v692_v22 = vadd.f32 %v691_v15, %v661_v14  ;;  %992 = vst [vmem:[%s1159_s24 + $0x70] sm:$0xff] %v972_v20  }
 0x10b   : > { %v693_v25 = vadd.f32 %v692_v22, %v662_v12  ;;  %v625_v26 = vadd.f32 %v624_v21, %v1171_v6 }
 0x10d   : > { %v626_v29 = vadd.f32 %v1162_v59, %v625_v26  ;;  %v694_v31 = vadd.f32 %v693_v25, %v663_v27  ;;  %v668_v59 = vmul.f32 %v1178_v19, %v1178_v19 }
 0x10f   : > { %v695_v33 = vadd.f32 %v694_v31, %v664_v28  ;;  %v627_v63 = vadd.f32 %v1167_v0, %v626_v29  ;;  %v669_v0 = vmul.f32 %v1183_v24, %v1183_v24 }
 0x111   : > { %v628_v35 = vadd.f32 %v627_v63, %v1181_v23  ;;  %v696_v36 = vadd.f32 %v695_v33, %v665_v32  ;;  %v670_v23 = vmul.f32 %v1197_v47, %v1197_v47 }
 0x113   : > { %v697_v37 = vadd.f32 %v696_v36, %v666_v34  ;;  %v629_v6 = vadd.f32 %v628_v35, %v1187_v30 }
 0x115   : > { %v630_v39 = vadd.f32 %v1178_v19, %v629_v6  ;;  %v698_v40 = vadd.f32 %v697_v37, %v667_v38 }
 0x117   : > { %v699_v41 = vadd.f32 %v698_v40, %v668_v59  ;;  %v631_v42 = vadd.f32 %v1183_v24, %v630_v39 }
 0x119   : > { %v632_v44 = vadd.f32 %v631_v42, %v1197_v47  ;;  %v700_v45 = vadd.f32 %v699_v41, %v669_v0 }
 0x11b   : > { %v701_v46 = vadd.f32 %v700_v45, %v670_v23  ;;  %v633_v30 = vadd.f32 %v632_v44, %v421_v54  ;;  %v675_v54 = vmul.f32 %v437_v18, %v437_v18 }
 0x11d   : > { %v634_v19 = vadd.f32 %v1194_v43, %v633_v30  ;;  %v702_v51 = vadd.f32 %v701_v46, %v671_v49 }
 0x11f   : > { %v703_v53 = vadd.f32 %v702_v51, %v672_v50  ;;  %v635_v24 = vadd.f32 %v1199_v48, %v634_v19 }
 0x121   : > { %v636_v56 = vadd.f32 %v635_v24, %v434_v11  ;;  %v704_v47 = vadd.f32 %v703_v53, %v673_v52 }
 0x123   : > { %v705_v57 = vadd.f32 %v704_v47, %v674_v55  ;;  %v637_v58 = vadd.f32 %v636_v56, %v437_v18 }
 0x125   : > { %v638_v61 = vadd.f32 %v1043_v7, %v637_v58  ;;  %v706_v62 = vadd.f32 %v705_v57, %v675_v54 }
 0x127   : > { %v639_v43 = vadd.f32 %v1044_v13, %v638_v61  ;;  %v707_v2 = vadd.f32 %v706_v62, %v676_v60 }
 0x129   : > { %v640_v3 = vrot.slane %v639_v43, 4  ;;  %v708_v4 = vadd.f32 %v707_v2, %v677_v1 }
 0x12b   : > { %v641_v5 = vadd.f32 %v640_v3, %v639_v43  ;;  %v709_v8 = vrot.slane %v708_v4, 4 }
 0x12d   : > { %v642_v9 = vrot.slane %v641_v5, 2  ;;  %v710_v48 = vadd.f32 %v709_v8, %v708_v4 }
 0x12f   : > { %v643_v10 = vadd.f32 %v642_v9, %v641_v5  ;;  %v711_v11 = vrot.slane %v710_v48, 2 }
 0x131   : > { %v644_v12 = vrot.slane %v643_v10, 1  ;;  %v712_v14 = vadd.f32 %v711_v11, %v710_v48 }
 0x133   : > { %v713_v15 = vrot.slane %v712_v14, 1  ;;  %v645_v7 = vadd.f32 %v644_v12, %v643_v10 }
 0x135   : > { %v714_v16 = vadd.f32 %v713_v15, %v712_v14 }
 0x137   : > { %v716_v13 = vsel %vm715_vm2, %v645_v7, %v714_v16 }
 0x138   : > { %v718_v17 = vsel %vm717_vm3, %v716_v13, 0.0 }
 0x139   : > { %719 = vst [vmem:[%s184_s28] sm:$0xff] %v718_v17 }
 0x13a PF: > { %s14_s12 = sadd.s32 1, %s1063_s12  }
 0x13b   : > { %p11_p5 = scmp.ge.s32.totalorder %s14_s12, 4  }
 0x13d   :  { %13 = sbr.rel (!%p11_p5) target bundleno = 1 (0x1), region = 70 }

// kernel: bottleneck_block_forward.7
= control target key start
LH: loop header
LB: loop body
LE: loop exit
PB: predicated region body
PF: predicated region fallthrough
CT: control target
= control target key end

     0   :  { %vm421_vm0 = vcmask 1040384   ;;  %vm423_vm1 = vcmask 1041408   ;;  %s781_s3 = inlined_call_operand.vmem [shape: bf16[128,128], index: 3, kind: input, shape index: {}]   ;;  %s782_s0 = inlined_call_operand.vmem [shape: bf16[128,128], index: 0, kind: input, shape index: {}]   ;;  %s783_s1 = inlined_call_operand.vmem [shape: f32[1,128], index: 1, kind: input, shape index: {}]   ;;  %s784_s2 = inlined_call_operand.vmem [shape: f32[1,128], index: 2, kind: input, shape index: {}]   ;;  %s785_s4 = inlined_call_operand.vmem [shape: bf16[128,128], index: 4, kind: output, shape index: {0}]   ;;  %s786_s5 = inlined_call_operand.vmem [shape: f32[1,8,128], index: 5, kind: output, shape index: {1}]  }
   0x1   :  { %v626_v0 = vld [vmem:[%s781_s3] sm:$0xff]   ;;  %v627_v1 = vld [vmem:[%s781_s3 + $0x8] sm:$0xff]   ;;  %v628_v2 = vld [vmem:[%s781_s3 + $0x10] sm:$0xff]  }
   0x2   :  { %578 = vmatprep.subr.bf16.mxu0 %v626_v0  ;;  %610 = vmatprep.subr.bf16.mxu1 %v626_v0  ;;  %v629_v3 = vld [vmem:[%s781_s3 + $0x18] sm:$0xff]   ;;  %v477_v4 = vld [vmem:[%s782_s0] sm:$0xff]   ;;  %v548_v8 = vld [vmem:[%s782_s0 + $0x8] sm:$0xff]  }
   0x3   :  { %579 = vmatpush3.bf16.msra.mxu0 %v626_v0  ;;  %618 = vmatpush3.bf16.msra.mxu1 %v626_v0  ;;  %v682_v5 = vld [vmem:[%s783_s1] ss:$0 sm:$0xff]  ;;  %v478_v6 = vunpack.c.l.bf16 %v477_v4  ;;  %v479_v7 = vunpack.c.h.bf16 %v477_v4  ;;  %v549_v9 = vld [vmem:[%s782_s0 + $0x10] sm:$0xff]   ;;  %v482_v11 = vunpack.c.l.bf16 %v548_v8  ;;  %v483_v14 = vunpack.c.h.bf16 %v548_v8  ;;  %v550_v22 = vld [vmem:[%s782_s0 + $0x18] sm:$0xff]  }
   0x4   :  { %580 = vmatprep.subr.bf16.mxu0 %v627_v1  ;;  %611 = vmatprep.subr.bf16.mxu1 %v627_v1  ;;  %v693_v10 = vld [vmem:[%s784_s2] ss:$0 sm:$0xff]  ;;  %v486_v17 = vunpack.c.l.bf16 %v549_v9  ;;  %v487_v21 = vunpack.c.h.bf16 %v549_v9  ;;  %v552_v27 = vld [vmem:[%s782_s0 + $0x28] sm:$0xff]   ;;  %v553_v30 = vld [vmem:[%s782_s0 + $0x30] sm:$0xff]   ;;  %v490_v32 = vunpack.c.l.bf16 %v550_v22  ;;  %v491_v33 = vunpack.c.h.bf16 %v550_v22 }
   0x5   :  { %v59_v12 = vmul.f32 %v478_v6, %v682_v5  ;;  %v60_v13 = vmul.f32 %v479_v7, %v682_v5  ;;  %v551_v15 = vld [vmem:[%s782_s0 + $0x20] sm:$0xff]   ;;  %v61_v20 = vmul.f32 %v482_v11, %v682_v5  ;;  %v62_v26 = vmul.f32 %v483_v14, %v682_v5  ;;  %v631_v28 = vld [vmem:[%s781_s3 + $0x28] sm:$0xff]   ;;  %v554_v39 = vld [vmem:[%s782_s0 + $0x38] sm:$0xff]  }
   0x6   :  { %v630_v16 = vld [vmem:[%s781_s3 + $0x20] sm:$0xff]   ;;  %v494_v23 = vunpack.c.l.bf16 %v551_v15  ;;  %v63_v29 = vmul.f32 %v486_v17, %v682_v5  ;;  %v495_v34 = vunpack.c.h.bf16 %v551_v15  ;;  %v64_v36 = vmul.f32 %v487_v21, %v682_v5  ;;  %v632_v44 = vld [vmem:[%s781_s3 + $0x30] sm:$0xff]   ;;  %v633_v61 = vld [vmem:[%s781_s3 + $0x38] sm:$0xff]  }
   0x7   :  { %581 = vmatpush3.bf16.msra.mxu0 %v627_v1  ;;  %619 = vmatpush3.bf16.msra.mxu1 %v627_v1  ;;  %v82_v18 = vadd.f32 %v693_v10, %v59_v12  ;;  %v83_v19 = vadd.f32 %v693_v10, %v60_v13  ;;  %v84_v35 = vadd.f32 %v693_v10, %v61_v20  ;;  %v498_v38 = vunpack.c.l.bf16 %v552_v27 }
   0x8   :  { %582 = vmatprep.subr.bf16.mxu0 %v628_v2  ;;  %612 = vmatprep.subr.bf16.mxu1 %v628_v2  ;;  %v67_v37 = vmul.f32 %v494_v23, %v682_v5  ;;  %v85_v40 = vadd.f32 %v693_v10, %v62_v26  ;;  %v68_v41 = vmul.f32 %v495_v34, %v682_v5  ;;  %v499_v42 = vunpack.c.h.bf16 %v552_v27 }
   0x9   :  { %v98_v24 = vmax.f32 %v82_v18, 0.0  ;;  %v99_v25 = vmax.f32 %v83_v19, 0.0  ;;  %v502_v43 = vunpack.c.l.bf16 %v553_v30  ;;  %v86_v45 = vadd.f32 %v693_v10, %v63_v29 }
   0xa   :  { %v90_v46 = vadd.f32 %v693_v10, %v67_v37  ;;  %v69_v47 = vmul.f32 %v498_v38, %v682_v5  ;;  %v503_v48 = vunpack.c.h.bf16 %v553_v30  ;;  %v91_v49 = vadd.f32 %v693_v10, %v68_v41 }
   0xb   :  { %583 = vmatpush3.bf16.msra.mxu0 %v628_v2  ;;  %620 = vmatpush3.bf16.msra.mxu1 %v628_v2  ;;  %v114_v31 = vpack.c.bf16 %v99_v25, %v98_v24  ;;  %v70_v50 = vmul.f32 %v499_v42, %v682_v5  ;;  %v71_v51 = vmul.f32 %v502_v43, %v682_v5  ;;  %v506_v52 = vunpack.c.l.bf16 %v554_v39 }
   0xc   :  { %584 = vmatprep.subr.bf16.mxu0 %v629_v3  ;;  %613 = vmatprep.subr.bf16.mxu1 %v629_v3  ;;  %v106_v53 = vmax.f32 %v90_v46, 0.0  ;;  %v92_v54 = vadd.f32 %v693_v10, %v69_v47  ;;  %v72_v55 = vmul.f32 %v503_v48, %v682_v5  ;;  %v507_v56 = vunpack.c.h.bf16 %v554_v39 }
   0xd   :  { %594 = vmatprep.mubr.bf16.mxu0 %v114_v31  ;;  %v87_v57 = vadd.f32 %v693_v10, %v64_v36  ;;  %v107_v58 = vmax.f32 %v91_v49, 0.0  ;;  %v93_v59 = vadd.f32 %v693_v10, %v70_v50  ;;  %v94_v60 = vadd.f32 %v693_v10, %v71_v51 }
   0xe   :  { %v65_v62 = vmul.f32 %v490_v32, %v682_v5  ;;  %v95_v63 = vadd.f32 %v693_v10, %v72_v55  ;;  %v100_v0 = vmax.f32 %v84_v35, 0.0  ;;  %v101_v1 = vmax.f32 %v85_v40, 0.0 }
   0xf   :  { %585 = vmatpush3.bf16.msra.mxu0 %v629_v3  ;;  %621 = vmatpush3.bf16.msra.mxu1 %v629_v3  ;;  %v66_v2 = vmul.f32 %v491_v33, %v682_v5  ;;  %v118_v3 = vpack.c.bf16 %v107_v58, %v106_v53  ;;  %v108_v4 = vmax.f32 %v92_v54, 0.0  ;;  %v109_v6 = vmax.f32 %v93_v59, 0.0 }
  0x10   :  { %586 = vmatprep.subr.bf16.mxu0 %v630_v16  ;;  %614 = vmatprep.subr.bf16.mxu1 %v630_v16  ;;  %v73_v7 = vmul.f32 %v506_v52, %v682_v5  ;;  %v74_v8 = vmul.f32 %v507_v56, %v682_v5  ;;  %v102_v9 = vmax.f32 %v86_v45, 0.0  ;;  %v103_v11 = vmax.f32 %v87_v57, 0.0 }
  0x11   :  { %v110_v12 = vmax.f32 %v94_v60, 0.0  ;;  %v111_v13 = vmax.f32 %v95_v63, 0.0  ;;  %v88_v14 = vadd.f32 %v693_v10, %v65_v62  ;;  %v89_v15 = vadd.f32 %v693_v10, %v66_v2  ;;  %602 = vmatprep.mubr.bf16.mxu1 %v118_v3 }
  0x12   :  { %v119_v17 = vpack.c.bf16 %v109_v6, %v108_v4  ;;  %v96_v18 = vadd.f32 %v693_v10, %v73_v7  ;;  %v97_v19 = vadd.f32 %v693_v10, %v74_v8  ;;  %v116_v5 = vpack.c.bf16 %v103_v11, %v102_v9 }
  0x13   :  { %587 = vmatpush3.bf16.msra.mxu0 %v630_v16  ;;  %622 = vmatpush3.bf16.msra.mxu1 %v630_v16  ;;  %v115_v16 = vpack.c.bf16 %v101_v1, %v100_v0  ;;  %v120_v20 = vpack.c.bf16 %v111_v13, %v110_v12  ;;  %v104_v21 = vmax.f32 %v88_v14, 0.0  ;;  %v105_v22 = vmax.f32 %v89_v15, 0.0 }
  0x14   :  { %588 = vmatprep.subr.bf16.mxu0 %v631_v28  ;;  %615 = vmatprep.subr.bf16.mxu1 %v631_v28  ;;  %v112_v23 = vmax.f32 %v96_v18, 0.0  ;;  %v113_v24 = vmax.f32 %v97_v19, 0.0 }
  0x15   :  { %v117_v25 = vpack.c.bf16 %v105_v22, %v104_v21 }
  0x16   :  { %v121_v26 = vpack.c.bf16 %v113_v24, %v112_v23 }
  0x17   :  { %589 = vmatpush3.bf16.msra.mxu0 %v631_v28  ;;  %623 = vmatpush3.bf16.msra.mxu1 %v631_v28 }
  0x18   :  { %590 = vmatprep.subr.bf16.mxu0 %v632_v44  ;;  %616 = vmatprep.subr.bf16.mxu1 %v632_v44 }
  0x1b   :  { %591 = vmatpush3.bf16.msra.mxu0 %v632_v44  ;;  %624 = vmatpush3.bf16.msra.mxu1 %v632_v44 }
  0x1c   :  { %592 = vmatprep.subr.bf16.mxu0 %v633_v61  ;;  %617 = vmatprep.subr.bf16.mxu1 %v633_v61 }
  0x1f   :  { %593 = vmatpush3.bf16.msra.mxu0 %v633_v61  ;;  %625 = vmatpush3.bf16.msra.mxu1 %v633_v61 }
  0x22   :  { %595 = vmatmul.mubr.bf16.vlgmr.msra.gmra.mrb[0].mxu0 %v115_v16  ;;  %603 = vmatmul.mubr.bf16.vlgmr.msra.gmra.mrb[0].mxu1 %v119_v17 }
  0x23   :  { %598 = vmatprep.mubr.bf16.mxu0 %v116_v5  ;;  %606 = vmatprep.mubr.bf16.mxu1 %v120_v20 }
  0x2a   :  { %599 = vmatmul.mubr.bf16.gmra.mrb[4].mxu0 %v117_v25  ;;  %607 = vmatmul.mubr.bf16.gmra.mrb[4].mxu1 %v121_v26 }
  0xf5   :  { %v596_v27 = vpop.f32.mrb[0].mxu0  ;;  %v604_v28 = vpop.f32.mrb[0].mxu1 }
  0xf6   :  { %v220_v29 = vpop.f32.mrb[1].mxu0  ;;  %v252_v10 = vpop.f32.mrb[1].mxu1  ;;  %v386_v41 = vmul.f32 %v596_v27, %v596_v27  ;;  %v394_v15 = vmul.f32 %v604_v28, %v604_v28 }
  0xf7   :  { %v597_v30 = vpop.f32.mrb[2].mxu0  ;;  %v605_v31 = vpop.f32.mrb[2].mxu1  ;;  %v384_v32 = vmul.f32 %v220_v29, %v220_v29  ;;  %v392_v8 = vmul.f32 %v252_v10, %v252_v10 }
  0xf8   :  { %v516_v33 = vpack.c.bf16 %v597_v30, %v596_v27  ;;  %v223_v34 = vpop.f32.mrb[3].mxu0  ;;  %v536_v35 = vpack.c.bf16 %v605_v31, %v604_v28  ;;  %v255_v36 = vpop.f32.mrb[3].mxu1  ;;  %v387_v44 = vmul.f32 %v597_v30, %v597_v30  ;;  %v395_v18 = vmul.f32 %v605_v31, %v605_v31 }
  0xf9   :  { %v511_v37 = vpack.c.bf16 %v223_v34, %v220_v29  ;;  %v363_v38 = vadd.f32 %v223_v34, %v220_v29  ;;  %v385_v39 = vmul.f32 %v223_v34, %v223_v34  ;;  %v531_v40 = vpack.c.bf16 %v255_v36, %v252_v10 }
  0xfa   :  { %555 = vst [vmem:[%s785_s4 + $0x8] sm:$0xff] %v516_v33   ;;  %559 = vst [vmem:[%s785_s4 + $0x28] sm:$0xff] %v536_v35   ;;  %v393_v14 = vmul.f32 %v255_v36, %v255_v36 }
  0xfb   :  { %512 = vst [vmem:[%s785_s4] sm:$0xff] %v511_v37   ;;  %v364_v42 = vadd.f32 %v596_v27, %v363_v38  ;;  %v400_v43 = vadd.f32 %v385_v39, %v384_v32  ;;  %558 = vst [vmem:[%s785_s4 + $0x20] sm:$0xff] %v531_v40  }
  0xfd   :  { %v401_v45 = vadd.f32 %v400_v43, %v386_v41  ;;  %v600_v46 = vpop.f32.mrb[4].mxu0  ;;  %v365_v47 = vadd.f32 %v597_v30, %v364_v42  ;;  %v608_v48 = vpop.f32.mrb[4].mxu1 }
  0xfe   :  { %v236_v49 = vpop.f32.mrb[5].mxu0  ;;  %v268_v50 = vpop.f32.mrb[5].mxu1  ;;  %v390_v1 = vmul.f32 %v600_v46, %v600_v46  ;;  %v398_v26 = vmul.f32 %v608_v48, %v608_v48 }
  0xff   :  { %v366_v51 = vadd.f32 %v365_v47, %v236_v49  ;;  %v388_v52 = vmul.f32 %v236_v49, %v236_v49  ;;  %v402_v53 = vadd.f32 %v401_v45, %v387_v44  ;;  %v601_v54 = vpop.f32.mrb[6].mxu0  ;;  %v609_v55 = vpop.f32.mrb[6].mxu1  ;;  %v396_v20 = vmul.f32 %v268_v50, %v268_v50 }
 0x100   :  { %v526_v56 = vpack.c.bf16 %v601_v54, %v600_v46  ;;  %v239_v57 = vpop.f32.mrb[7].mxu0  ;;  %v546_v58 = vpack.c.bf16 %v609_v55, %v608_v48  ;;  %v271_v59 = vpop.f32.mrb[7].mxu1  ;;  %v391_v4 = vmul.f32 %v601_v54, %v601_v54 }
 0x101   :  { %v403_v60 = vadd.f32 %v402_v53, %v388_v52  ;;  %v521_v61 = vpack.c.bf16 %v239_v57, %v236_v49  ;;  %v367_v62 = vadd.f32 %v366_v51, %v239_v57  ;;  %v389_v63 = vmul.f32 %v239_v57, %v239_v57 }
 0x102   :  { %557 = vst [vmem:[%s785_s4 + $0x18] sm:$0xff] %v526_v56   ;;  %561 = vst [vmem:[%s785_s4 + $0x38] sm:$0xff] %v546_v58   ;;  %v541_v0 = vpack.c.bf16 %v271_v59, %v268_v50  ;;  %v397_v25 = vmul.f32 %v271_v59, %v271_v59 }
 0x103   :  { %556 = vst [vmem:[%s785_s4 + $0x10] sm:$0xff] %v521_v61   ;;  %v368_v2 = vadd.f32 %v600_v46, %v367_v62  ;;  %v404_v3 = vadd.f32 %v403_v60, %v389_v63 }
 0x104   :  { %560 = vst [vmem:[%s785_s4 + $0x30] sm:$0xff] %v541_v0  }
 0x105   :  { %v405_v6 = vadd.f32 %v404_v3, %v390_v1  ;;  %v369_v7 = vadd.f32 %v601_v54, %v368_v2 }
 0x107   :  { %v370_v9 = vadd.f32 %v369_v7, %v252_v10  ;;  %v406_v11 = vadd.f32 %v405_v6, %v391_v4  ;;  %v399_v10 = vmul.f32 %v609_v55, %v609_v55 }
 0x109   :  { %v407_v12 = vadd.f32 %v406_v11, %v392_v8  ;;  %v371_v13 = vadd.f32 %v370_v9, %v255_v36 }
 0x10b   :  { %v372_v16 = vadd.f32 %v604_v28, %v371_v13  ;;  %v408_v17 = vadd.f32 %v407_v12, %v393_v14 }
 0x10d   :  { %v409_v19 = vadd.f32 %v408_v17, %v394_v15  ;;  %v373_v5 = vadd.f32 %v605_v31, %v372_v16 }
 0x10f   :  { %v374_v21 = vadd.f32 %v373_v5, %v268_v50  ;;  %v410_v22 = vadd.f32 %v409_v19, %v395_v18 }
 0x111   :  { %v411_v23 = vadd.f32 %v410_v22, %v396_v20  ;;  %v375_v24 = vadd.f32 %v374_v21, %v271_v59 }
 0x113   :  { %v376_v27 = vadd.f32 %v608_v48, %v375_v24  ;;  %v412_v29 = vadd.f32 %v411_v23, %v397_v25 }
 0x115   :  { %v377_v30 = vadd.f32 %v609_v55, %v376_v27  ;;  %v413_v32 = vadd.f32 %v412_v29, %v398_v26 }
 0x117   :  { %v378_v33 = vrot.slane %v377_v30, 4  ;;  %v414_v34 = vadd.f32 %v413_v32, %v399_v10 }
 0x119   :  { %v379_v35 = vadd.f32 %v378_v33, %v377_v30  ;;  %v415_v28 = vrot.slane %v414_v34, 4 }
 0x11b   :  { %v380_v36 = vrot.slane %v379_v35, 2  ;;  %v416_v37 = vadd.f32 %v415_v28, %v414_v34 }
 0x11d   :  { %v381_v38 = vadd.f32 %v380_v36, %v379_v35  ;;  %v417_v31 = vrot.slane %v416_v37, 2 }
 0x11f   :  { %v382_v39 = vrot.slane %v381_v38, 1  ;;  %v418_v40 = vadd.f32 %v417_v31, %v416_v37 }
 0x121   :  { %v419_v41 = vrot.slane %v418_v40, 1  ;;  %v383_v42 = vadd.f32 %v382_v39, %v381_v38 }
 0x123   :  { %v420_v43 = vadd.f32 %v419_v41, %v418_v40 }
 0x125   :  { %v422_v44 = vsel %vm421_vm0, %v383_v42, %v420_v43 }
 0x126   :  { %v424_v45 = vsel %vm423_vm1, %v422_v44, 0.0 }
 0x127   :  { %425 = vst [vmem:[%s786_s5] sm:$0xff] %v424_v45 }

// kernel: bottleneck_block_forward.6
= control target key start
LH: loop header
LB: loop body
LE: loop exit
PB: predicated region body
PF: predicated region fallthrough
CT: control target
= control target key end

     0   :  { %s2307_s18 = smov 0   ;;  %s2853_s0 = inlined_call_operand.vmem [shape: bf16[2,4,8,8,128], index: 0, kind: input, shape index: {}]   ;;  %s2854_s1 = inlined_call_operand.vmem [shape: f32[1,128], index: 1, kind: input, shape index: {}]   ;;  %s2855_s2 = inlined_call_operand.vmem [shape: f32[1,128], index: 2, kind: input, shape index: {}]   ;;  %s2856_s3 = inlined_call_operand.vmem [shape: bf16[1152,128], index: 3, kind: input, shape index: {}]   ;;  %s2857_s4 = inlined_call_operand.vmem [shape: bf16[2,64,128], index: 4, kind: output, shape index: {0}]   ;;  %s2858_s5 = inlined_call_operand.vmem [shape: f32[2,8,128], index: 5, kind: output, shape index: {1}]  }
   0x1 LB: > { %s1739_s19 = sadd.s32 4294967295, %s2274_s18   ;;  %p1743_p0 = scmp.ge.s32.totalorder %s2274_s18, 1  ;;  %s2274_s18 = sphi %s2307_s18, %s16_s18  }
   0x2   : > { %p190_p1 = scmp.lt.s32.totalorder %s2274_s18, 3 }
   0x4   : > { %p191_p2 = pnand %p1743_p0, %p190_p1 }
   0x5   : > { %v2196_v0 = vld [vmem:[%s2856_s3 + $0x40] sm:$0xff] (!%p191_p2)   ;;  %v2276_v3 = vmov (!%p191_p2), 0.0   ;;  %v2200_v5 = vld [vmem:[%s2856_s3 + $0x48] sm:$0xff] (!%p191_p2)   ;;  %v2204_v9 = vld [vmem:[%s2856_s3 + $0x50] sm:$0xff] (!%p191_p2)   ;;  %p222_p3 = scmp.lt.s32.totalorder (!%p191_p2), %s1739_s19, 1  ;;  %vm1648_vm0 = vcmask (!%p191_p2), 1040384  }
   0x6   : > { %194 = sbr.rel (%p191_p2) target bundleno = 356 (0x164), region = 36  ;;  %v2197_v1 = vld [vmem:[%s2856_s3 + $0xc0] sm:$0xff] (!%p191_p2)   ;;  %1975 = vmatprep.subr.bf16.mxu0 (!%p191_p2), %v2196_v0  ;;  %237 = vst [vmem:[#allocation2] sm:$0xff] (!%p191_p2), %v2276_v3  ;;  %238 = vst [vmem:[#allocation2 + $0x8] sm:$0x1] (!%p191_p2), %v2276_v3  ;;  %v2201_v6 = vld [vmem:[%s2856_s3 + $0xc8] sm:$0xff] (!%p191_p2)  }
   0x7   : > { %v2198_v2 = vld [vmem:[%s2856_s3] sm:$0xff] (!%p191_p2)   ;;  %239 = vst [vmem:[#allocation2 + $0x10] sm:$0xff] (!%p191_p2), %v2276_v3  ;;  %241 = vst [vmem:[#allocation2 + $0x20] sm:$0xff] (!%p191_p2), %v2276_v3  ;;  %2015 = vmatprep.subr.bf16.mxu1 (!%p191_p2), %v2197_v1  ;;  %v2202_v7 = vld [vmem:[%s2856_s3 + $0x8] sm:$0xff] (!%p191_p2)   ;;  %vm1650_vm1 = vcmask (!%p191_p2), 1041408  }
   0x8   : > { %243 = vst [vmem:[#allocation2 + $0x30] sm:$0xff] (!%p191_p2), %v2276_v3  ;;  %245 = vst [vmem:[#allocation2 + $0x40] sm:$0xff] (!%p191_p2), %v2276_v3  ;;  %v2199_v4 = vld [vmem:[%s2856_s3 + $0x80] sm:$0xff] (!%p191_p2)   ;;  %1976 = vmatpush3.bf16.msra.mxu0 (!%p191_p2), %v2198_v2  ;;  %v2203_v8 = vld [vmem:[%s2856_s3 + $0x88] sm:$0xff] (!%p191_p2)  }
   0x9   : > { %247 = vst [vmem:[#allocation2 + $0x50] sm:$0xff] (!%p191_p2), %v2276_v3  ;;  %249 = vst [vmem:[#allocation2 + $0x60] sm:$0xff] (!%p191_p2), %v2276_v3  ;;  %2016 = vmatpush3.bf16.msra.mxu1 (!%p191_p2), %v2199_v4  ;;  %1977 = vmatprep.subr.bf16.mxu0 (!%p191_p2), %v2200_v5  ;;  %v2205_v10 = vld [vmem:[%s2856_s3 + $0xd0] sm:$0xff] (!%p191_p2)   ;;  %v2208_v13 = vld [vmem:[%s2856_s3 + $0x58] sm:$0xff] (!%p191_p2)  }
   0xa   : > { %251 = vst [vmem:[#allocation2 + $0x70] sm:$0xff] (!%p191_p2), %v2276_v3  ;;  %253 = vst [vmem:[#allocation2 + $0x80] sm:$0xff] (!%p191_p2), %v2276_v3  ;;  %2017 = vmatprep.subr.bf16.mxu1 (!%p191_p2), %v2201_v6  ;;  %v2206_v11 = vld [vmem:[%s2856_s3 + $0x10] sm:$0xff] (!%p191_p2)   ;;  %v2209_v14 = vld [vmem:[%s2856_s3 + $0xd8] sm:$0xff] (!%p191_p2)  }
   0xb   : > { %273 = vst [vmem:[#allocation2 + $0x120] sm:$0xff] (!%p191_p2), %v2276_v3  ;;  %275 = vst [vmem:[#allocation2 + $0x130] sm:$0xff] (!%p191_p2), %v2276_v3  ;;  %v2207_v12 = vld [vmem:[%s2856_s3 + $0x90] sm:$0xff] (!%p191_p2)   ;;  %v2210_v15 = vld [vmem:[%s2856_s3 + $0x18] sm:$0xff] (!%p191_p2)  }
   0xc   : > { %277 = vst [vmem:[#allocation2 + $0x140] sm:$0xff] (!%p191_p2), %v2276_v3  ;;  %279 = vst [vmem:[#allocation2 + $0x150] sm:$0xff] (!%p191_p2), %v2276_v3  ;;  %1978 = vmatpush3.bf16.msra.mxu0 (!%p191_p2), %v2202_v7  ;;  %v2211_v16 = vld [vmem:[%s2856_s3 + $0x98] sm:$0xff] (!%p191_p2)   ;;  %v2212_v17 = vld [vmem:[%s2856_s3 + $0x60] sm:$0xff] (!%p191_p2)  }
   0xd   : > { %281 = vst [vmem:[#allocation2 + $0x160] sm:$0xff] %v2276_v3  ;;  %283 = vst [vmem:[#allocation2 + $0x170] sm:$0xff] %v2276_v3  ;;  %2018 = vmatpush3.bf16.msra.mxu1 %v2203_v8  ;;  %1979 = vmatprep.subr.bf16.mxu0 %v2204_v9  ;;  %v2213_v18 = vld [vmem:[%s2856_s3 + $0xe0] sm:$0xff]   ;;  %v2216_v21 = vld [vmem:[%s2856_s3 + $0x68] sm:$0xff]   ;;  %s2867_s19 = smov (!%p222_p3, %s1739_s19), 1 }
   0xe   : > { %285 = vst [vmem:[#allocation2 + $0x180] sm:$0xff] %v2276_v3  ;;  %287 = vst [vmem:[#allocation2 + $0x190] sm:$0xff] %v2276_v3  ;;  %2019 = vmatprep.subr.bf16.mxu1 %v2205_v10  ;;  %v2214_v19 = vld [vmem:[%s2856_s3 + $0x20] sm:$0xff]   ;;  %v2217_v22 = vld [vmem:[%s2856_s3 + $0xe8] sm:$0xff]   ;;  %s1863_s30 = sshll.u32 %s2867_s19, 7  ;;  %s1864_s11 = sshll.u32 %s2867_s19, 5 }
   0xf   : > { %v2215_v20 = vld [vmem:[%s2856_s3 + $0xa0] sm:$0xff]   ;;  %v2218_v23 = vld [vmem:[%s2856_s3 + $0x28] sm:$0xff]   ;;  %v2220_v25 = vld [vmem:[%s2856_s3 + $0x70] sm:$0xff]   ;;  %s2436_s14 = scalar_lea.vmem %s2853_s0, %s1863_s30  ;;  %s231_s15 = scalar_lea.vmem %s2857_s4, %s1864_s11 }
  0x10   : > { %1980 = vmatpush3.bf16.msra.mxu0 %v2206_v11  ;;  %v2219_v24 = vld [vmem:[%s2856_s3 + $0xa8] sm:$0xff]   ;;  %v2221_v26 = vld [vmem:[%s2856_s3 + $0xf0] sm:$0xff]   ;;  %v2224_v29 = vld [vmem:[%s2856_s3 + $0x78] sm:$0xff]   ;;  %s1748_s16 = sshll.u32 %s2867_s19, 3 }
  0x11   : > { %2020 = vmatpush3.bf16.msra.mxu1 %v2207_v12  ;;  %1981 = vmatprep.subr.bf16.mxu0 %v2208_v13  ;;  %v2222_v27 = vld [vmem:[%s2856_s3 + $0x30] sm:$0xff]   ;;  %v2225_v30 = vld [vmem:[%s2856_s3 + $0xf8] sm:$0xff]   ;;  %v1964_v33 = vld [vmem:[%s2436_s14 + $0x40] sm:$0xff]   ;;  %s235_s21 = scalar_lea.vmem %s2858_s5, %s1748_s16 }
  0x12   : > { %2021 = vmatprep.subr.bf16.mxu1 %v2209_v14  ;;  %v2223_v28 = vld [vmem:[%s2856_s3 + $0xb0] sm:$0xff]   ;;  %v2226_v31 = vld [vmem:[%s2856_s3 + $0x38] sm:$0xff]   ;;  %v2445_v34 = vld [vmem:[%s2854_s1] ss:$0 sm:$0xff]  ;;  %v1907_v35 = vunpack.c.l.bf16 %v1964_v33  ;;  %v1908_v36 = vunpack.c.h.bf16 %v1964_v33 }
  0x13   : > { %v2227_v32 = vld [vmem:[%s2856_s3 + $0xb8] sm:$0xff]   ;;  %v2450_v37 = vld [vmem:[%s2855_s2] ss:$0 sm:$0xff]  ;;  %v1965_v63 = vld [vmem:[%s2436_s14 + $0x48] sm:$0xff]  }
  0x14   : > { %1982 = vmatpush3.bf16.msra.mxu0 %v2210_v15  ;;  %v1960_v38 = vld [vmem:[%s2436_s14 + $0x20] sm:$0xff]   ;;  %v460_v45 = vmul.f32 %v1907_v35, %v2445_v34  ;;  %v461_v47 = vmul.f32 %v1908_v36, %v2445_v34  ;;  %v1961_v1 = vld [vmem:[%s2436_s14 + $0x28] sm:$0xff]   ;;  %v1911_v4 = vunpack.c.l.bf16 %v1965_v63  ;;  %v1912_v8 = vunpack.c.h.bf16 %v1965_v63 }
  0x15   : > { %2022 = vmatpush3.bf16.msra.mxu1 %v2211_v16  ;;  %1983 = vmatprep.subr.bf16.mxu0 %v2212_v17  ;;  %v1968_v39 = vld [vmem:[%s2436_s14 + $0x60] sm:$0xff]   ;;  %v1891_v40 = vunpack.c.l.bf16 %v1960_v38  ;;  %v1892_v41 = vunpack.c.h.bf16 %v1960_v38  ;;  %v1895_v5 = vunpack.c.l.bf16 %v1961_v1  ;;  %v1896_v6 = vunpack.c.h.bf16 %v1961_v1  ;;  %v1969_v7 = vld [vmem:[%s2436_s14 + $0x68] sm:$0xff]   ;;  %v2237_v1 = vld [vmem:[%s2856_s3 + $0x1d0] sm:$0xff]  }
  0x16   : > { %2023 = vmatprep.subr.bf16.mxu1 %v2213_v18  ;;  %v1923_v42 = vunpack.c.l.bf16 %v1968_v39  ;;  %v2228_v43 = vld [vmem:[%s2856_s3 + $0x140] sm:$0xff]   ;;  %v1924_v44 = vunpack.c.h.bf16 %v1968_v39  ;;  %v2467_v52 = vadd.f32 %v2450_v37, %v460_v45  ;;  %v2470_v53 = vadd.f32 %v2450_v37, %v461_v47  ;;  %v2232_v38 = vld [vmem:[%s2856_s3 + $0x148] sm:$0xff]   ;;  %v1966_v45 = vld [vmem:[%s2436_s14 + $0x50] sm:$0xff]  }
  0x17   : > { %v2229_v46 = vld [vmem:[%s2856_s3 + $0x1c0] sm:$0xff]   ;;  %v396_v48 = vmul.f32 %v1891_v40, %v2445_v34  ;;  %v397_v49 = vmul.f32 %v1892_v41, %v2445_v34  ;;  %v1927_v9 = vunpack.c.l.bf16 %v1969_v7  ;;  %v1928_v10 = vunpack.c.h.bf16 %v1969_v7  ;;  %v2233_v40 = vld [vmem:[%s2856_s3 + $0x1c8] sm:$0xff]   ;;  %v1962_v47 = vld [vmem:[%s2436_s14 + $0x30] sm:$0xff]  }
  0x18   : > { %1984 = vmatpush3.bf16.msra.mxu0 %v2214_v19  ;;  %v524_v50 = vmul.f32 %v1923_v42, %v2445_v34  ;;  %v525_v51 = vmul.f32 %v1924_v44, %v2445_v34  ;;  %v483_v58 = vmax.f32 %v2467_v52, 0.0  ;;  %v484_v0 = vmax.f32 %v2470_v53, 0.0  ;;  %v581_v16 = vld [vmem:[#allocation2 + $0x1] sm:$0xff] }
  0x19   : > { %2024 = vmatpush3.bf16.msra.mxu1 %v2215_v20  ;;  %1985 = vmatprep.subr.bf16.mxu0 %v2216_v21  ;;  %v2473_v54 = vadd.f32 %v2450_v37, %v396_v48  ;;  %v2476_v55 = vadd.f32 %v2450_v37, %v397_v49  ;;  %v462_v12 = vmul.f32 %v1911_v4, %v2445_v34  ;;  %v2230_v19 = vld [vmem:[%s2856_s3 + $0x100] sm:$0xff]   ;;  %v2234_v41 = vld [vmem:[%s2856_s3 + $0x108] sm:$0xff]   ;;  %v1970_v48 = vld [vmem:[%s2436_s14 + $0x70] sm:$0xff]   ;;  %v1916_v49 = vunpack.c.h.bf16 %v1966_v45 }
  0x1a   : > { %2025 = vmatprep.subr.bf16.mxu1 %v2217_v22  ;;  %v539_v56 = vadd.f32 %v2450_v37, %v524_v50  ;;  %v540_v57 = vadd.f32 %v2450_v37, %v525_v51  ;;  %v638_v62 = vpack.c.bf16 %v483_v58, %v2276_v3  ;;  %v398_v13 = vmul.f32 %v1895_v5, %v2445_v34  ;;  %v2235_v44 = vld [vmem:[%s2856_s3 + $0x188] sm:$0xff]   ;;  %v2236_v51 = vld [vmem:[%s2856_s3 + $0x150] sm:$0xff]   ;;  %v2260_v52 = vld [vmem:[%s2856_s3 + $0x200] sm:$0xff]  }
  0x1b   : > { %v419_v59 = vmax.f32 %v2473_v54, 0.0  ;;  %v420_v60 = vmax.f32 %v2476_v55, 0.0  ;;  %v399_v14 = vmul.f32 %v1896_v6, %v2445_v34  ;;  %v463_v15 = vmul.f32 %v1912_v8, %v2445_v34  ;;  %v2238_v6 = vld [vmem:[%s2856_s3 + $0x110] sm:$0xff]  }
  0x1c   : > { %1986 = vmatpush3.bf16.msra.mxu0 %v2218_v23  ;;  %v2483_v61 = vmax.f32 %v539_v56, 0.0  ;;  %v2496_v2 = vmax.f32 %v540_v57, 0.0  ;;  %1281 = vmatprep.mubr.bf16.mxu0 %v638_v62  ;;  %v526_v17 = vmul.f32 %v1927_v9, %v2445_v34  ;;  %v527_v18 = vmul.f32 %v1928_v10, %v2445_v34 }
  0x1d   : > { %2026 = vmatpush3.bf16.msra.mxu1 %v2219_v24  ;;  %1987 = vmatprep.subr.bf16.mxu0 %v2220_v25  ;;  %428 = vst [vmem:[#allocation2 + $0x121] sm:$0xff] %v419_v59  ;;  %429 = vst [vmem:[#allocation2 + $0x131] sm:$0xff] %v420_v60  ;;  %v2512_v20 = vadd.f32 %v2450_v37, %v462_v12  ;;  %v2515_v21 = vadd.f32 %v2450_v37, %v398_v13  ;;  %v2231_v24 = vld [vmem:[%s2856_s3 + $0x180] sm:$0xff]   ;;  %v1899_v56 = vunpack.c.l.bf16 %v1962_v47 }
  0x1e   : > { %2027 = vmatprep.subr.bf16.mxu1 %v2221_v26  ;;  %556 = vst [vmem:[#allocation2 + $0x11] sm:$0xff] %v2483_v61  ;;  %557 = vst [vmem:[#allocation2 + $0x21] sm:$0xff] %v2496_v2  ;;  %v2518_v22 = vadd.f32 %v2450_v37, %v399_v14  ;;  %v2521_v23 = vadd.f32 %v2450_v37, %v463_v15  ;;  %v541_v25 = vadd.f32 %v2450_v37, %v526_v17  ;;  %v2239_v14 = vld [vmem:[%s2856_s3 + $0x190] sm:$0xff]   ;;  %v2240_v15 = vld [vmem:[%s2856_s3 + $0x158] sm:$0xff]  }
  0x1f   : > { %v542_v26 = vadd.f32 %v2450_v37, %v527_v18  ;;  %v1900_v57 = vunpack.c.h.bf16 %v1962_v47  ;;  %v1931_v62 = vunpack.c.l.bf16 %v1970_v48  ;;  %v1932_v63 = vunpack.c.h.bf16 %v1970_v48  ;;  %v2244_v48 = vld [vmem:[%s2856_s3 + $0x160] sm:$0xff]  }
  0x20   : > { %1988 = vmatpush3.bf16.msra.mxu0 %v2222_v27  ;;  %v422_v33 = vmax.f32 %v2518_v22, 0.0  ;;  %v2539_v39 = vmax.f32 %v541_v25, 0.0  ;;  %v486_v42 = vmax.f32 %v2521_v23, 0.0  ;;  %v465_v5 = vmul.f32 %v1916_v49, %v2445_v34 }
  0x21   : > { %2028 = vmatpush3.bf16.msra.mxu1 %v2223_v28  ;;  %1989 = vmatprep.subr.bf16.mxu0 %v2224_v29  ;;  %v400_v7 = vmul.f32 %v1899_v56, %v2445_v34  ;;  %v401_v8 = vmul.f32 %v1900_v57, %v2445_v34  ;;  %v528_v9 = vmul.f32 %v1931_v62, %v2445_v34  ;;  %v2246_v56 = vld [vmem:[%s2856_s3 + $0x120] sm:$0xff]   ;;  %v1967_v57 = vld [vmem:[%s2436_s14 + $0x58] sm:$0xff]  }
  0x22   : > { %2029 = vmatprep.subr.bf16.mxu1 %v2225_v30  ;;  %v639_v30 = vpack.c.bf16 %v2483_v61, %v581_v16  ;;  %431 = vst [vmem:[#allocation2 + $0x151] sm:$0xff] %v422_v33  ;;  %558 = vst [vmem:[#allocation2 + $0x31] sm:$0xff] %v2539_v39  ;;  %v529_v10 = vmul.f32 %v1932_v63, %v2445_v34  ;;  %v648_v13 = vpack.c.bf16 %v2539_v39, %v2496_v2  ;;  %v1963_v62 = vld [vmem:[%s2436_s14 + $0x38] sm:$0xff]  }
  0x23   : > { %v2597_v17 = vadd.f32 %v2450_v37, %v465_v5  ;;  %v2603_v25 = vadd.f32 %v2450_v37, %v401_v8  ;;  %v1919_v63 = vunpack.c.l.bf16 %v1967_v57  ;;  %v1971_v5 = vld [vmem:[%s2436_s14 + $0x78] sm:$0xff]  }
  0x24   : > { %1990 = vmatpush3.bf16.msra.mxu0 %v2226_v31  ;;  %v589_v27 = vld [vmem:[#allocation2 + $0x120] sm:$0xff]  ;;  %v590_v28 = vld [vmem:[#allocation2 + $0x130] sm:$0xff]  ;;  %v485_v31 = vmax.f32 %v2512_v20, 0.0  ;;  %v1935_v8 = vunpack.c.l.bf16 %v1971_v5  ;;  %v2263_v20 = vld [vmem:[%s2856_s3 + $0x218] sm:$0xff]  }
  0x25   : > { %2030 = vmatpush3.bf16.msra.mxu1 %v2227_v32  ;;  %2055 = vmatprep.subr.bf16.mxu0 %v2228_v43  ;;  %v2528_v29 = vld [vmem:[#allocation2 + $0x10] sm:$0xff]  ;;  %v421_v32 = vmax.f32 %v2515_v21, 0.0  ;;  %v640_v35 = vpack.c.bf16 %v590_v28, %v589_v27  ;;  %v2556_v43 = vmax.f32 %v542_v26, 0.0  ;;  %v2583_v12 = vld [vmem:[#allocation2 + $0x20] sm:$0xff]  ;;  %v543_v26 = vadd.f32 %v2450_v37, %v528_v9 }
  0x26   : > { %2095 = vmatprep.subr.bf16.mxu1 %v2229_v46  ;;  %v637_v36 = vpack.c.bf16 %v2528_v29, %v2276_v3  ;;  %v647_v3 = vpack.c.bf16 %v485_v31, %v484_v0  ;;  %v1915_v46 = vunpack.c.l.bf16 %v1966_v45  ;;  %v1936_v9 = vunpack.c.h.bf16 %v1971_v5  ;;  %v2250_v5 = vld [vmem:[%s2856_s3 + $0x128] sm:$0xff]  }
  0x27   : > { %430 = vst [vmem:[#allocation2 + $0x141] sm:$0xff] %v421_v32  ;;  %1346 = vmatprep.mubr.bf16.mxu1 %v640_v35  ;;  %559 = vst [vmem:[#allocation2 + $0x41] sm:$0xff] %v2556_v43  ;;  %v2621_v45 = vmax.f32 %v543_v26, 0.0  ;;  %v530_v26 = vmul.f32 %v1935_v8, %v2445_v34 }
  0x28   : > { %1282 = vmatmul.mubr.bf16.vlgmr.msra.gmra.mrb[0].mxu0 %v637_v36  ;;  %1347 = vmatmul.mubr.bf16.vlgmr.msra.gmra.mrb[0].mxu1 %v639_v30  ;;  %v464_v4 = vmul.f32 %v1915_v46, %v2445_v34  ;;  %v2241_v30 = vld [vmem:[%s2856_s3 + $0x1d8] sm:$0xff]   ;;  %v488_v36 = vmax.f32 %v2597_v17, 0.0 }
  0x29   : > { %2056 = vmatpush3.bf16.msra.mxu0 %v2230_v19  ;;  %2096 = vmatpush3.bf16.msra.mxu1 %v2231_v24  ;;  %v592_v19 = vld [vmem:[#allocation2 + $0x150] sm:$0xff]  ;;  %v2600_v24 = vadd.f32 %v2450_v37, %v400_v7  ;;  %v2243_v46 = vld [vmem:[%s2856_s3 + $0x198] sm:$0xff]   ;;  %560 = vst [vmem:[#allocation2 + $0x51] sm:$0xff] %v2621_v45  ;;  %v2247_v7 = vld [vmem:[%s2856_s3 + $0x1a0] sm:$0xff]  }
  0x2a   : > { %2057 = vmatprep.subr.bf16.mxu0 %v2232_v38  ;;  %2097 = vmatprep.subr.bf16.mxu1 %v2233_v40  ;;  %v2594_v16 = vadd.f32 %v2450_v37, %v464_v4  ;;  %v2606_v28 = vld [vmem:[#allocation2 + $0x30] sm:$0xff]  ;;  %v544_v38 = vadd.f32 %v2450_v37, %v529_v10  ;;  %v1904_v4 = vunpack.c.h.bf16 %v1963_v62  ;;  %v2248_v10 = vld [vmem:[%s2856_s3 + $0x168] sm:$0xff]  }
  0x2b   : > { %1289 = vmatprep.mubr.bf16.mxu0 %v647_v3  ;;  %v646_v40 = vpack.c.bf16 %v2606_v28, %v2583_v12  ;;  %v423_v3 = vmax.f32 %v2600_v24, 0.0 }
  0x2c   : > { %v487_v35 = vmax.f32 %v2594_v16, 0.0  ;;  %v2633_v49 = vmax.f32 %v544_v38, 0.0 }
  0x2d   : > { %2058 = vmatpush3.bf16.msra.mxu0 %v2234_v41  ;;  %2098 = vmatpush3.bf16.msra.mxu1 %v2235_v44  ;;  %v2242_v41 = vld [vmem:[%s2856_s3 + $0x118] sm:$0xff]   ;;  %v424_v44 = vmax.f32 %v2603_v25, 0.0  ;;  %432 = vst [vmem:[#allocation2 + $0x161] sm:$0xff] %v423_v3 }
  0x2e   : > { %v591_v18 = vld [vmem:[#allocation2 + $0x140] sm:$0xff]  ;;  %2059 = vmatprep.subr.bf16.mxu0 %v2236_v51  ;;  %2099 = vmatprep.subr.bf16.mxu1 %v2237_v1  ;;  %v656_v47 = vpack.c.bf16 %v487_v35, %v486_v42  ;;  %561 = vst [vmem:[#allocation2 + $0x61] sm:$0xff] %v2633_v49  ;;  %v1903_v1 = vunpack.c.l.bf16 %v1963_v62 }
  0x2f   : > { %v649_v27 = vpack.c.bf16 %v592_v19, %v591_v18  ;;  %433 = vst [vmem:[#allocation2 + $0x171] sm:$0xff] %v424_v44  ;;  %v2245_v51 = vld [vmem:[%s2856_s3 + $0x1e0] sm:$0xff]   ;;  %v660_v23 = vpack.c.bf16 %v424_v44, %v423_v3  ;;  %v2267_v44 = vld [vmem:[%s2856_s3 + $0x238] sm:$0xff]  }
  0x30   : > { %1290 = vmatmul.mubr.bf16.gmra.mrb[4].mxu0 %v646_v40  ;;  %v2660_v19 = vld [vmem:[#allocation2 + $0x40] sm:$0xff] }
  0x31   : > { %1354 = vmatprep.mubr.bf16.mxu1 %v649_v27  ;;  %2060 = vmatpush3.bf16.msra.mxu0 %v2238_v6  ;;  %v1920_v6 = vunpack.c.h.bf16 %v1967_v57  ;;  %v531_v27 = vmul.f32 %v1936_v9, %v2445_v34  ;;  %v545_v57 = vadd.f32 %v2450_v37, %v530_v26  ;;  %v1874_v26 = vld [vmem:[%s2436_s14] sm:$0xff]   ;;  %v652_v22 = vpack.c.bf16 %v2660_v19, %v2606_v28 }
  0x32   : > { %1355 = vmatmul.mubr.bf16.gmra.mrb[4].mxu1 %v648_v13  ;;  %2061 = vmatprep.subr.bf16.mxu0 %v2240_v15  ;;  %v466_v13 = vmul.f32 %v1919_v63, %v2445_v34  ;;  %v403_v15 = vmul.f32 %v1904_v4, %v2445_v34 }
  0x33   : > { %2100 = vmatpush3.bf16.msra.mxu1 %v2239_v14  ;;  %1297 = vmatprep.mubr.bf16.mxu0 %v656_v47  ;;  %v402_v14 = vmul.f32 %v1903_v1, %v2445_v34  ;;  %v467_v18 = vmul.f32 %v1920_v6, %v2445_v34  ;;  %v2685_v63 = vadd.f32 %v2450_v37, %v531_v27 }
  0x34   : > { %2101 = vmatprep.subr.bf16.mxu1 %v2241_v30  ;;  %v2249_v30 = vld [vmem:[%s2856_s3 + $0x1e8] sm:$0xff]   ;;  %v2668_v38 = vadd.f32 %v2450_v37, %v466_v13  ;;  %v2698_v13 = vmax.f32 %v545_v57, 0.0  ;;  %v2257_v57 = vld [vmem:[%s2856_s3 + $0x1f8] sm:$0xff]  }
  0x35   : > { %2062 = vmatpush3.bf16.msra.mxu0 %v2242_v41  ;;  %v2671_v40 = vadd.f32 %v2450_v37, %v402_v14  ;;  %v2674_v41 = vadd.f32 %v2450_v37, %v403_v15  ;;  %v2682_v62 = vadd.f32 %v2450_v37, %v467_v18  ;;  %v2253_v14 = vld [vmem:[%s2856_s3 + $0x1f0] sm:$0xff]  }
  0x36   : > { %2063 = vmatprep.subr.bf16.mxu0 %v2244_v48  ;;  %v594_v47 = vld [vmem:[#allocation2 + $0x170] sm:$0xff]  ;;  %v2860_v6 = vmax.f32 %v2668_v38, 0.0  ;;  %562 = vst [vmem:[#allocation2 + $0x71] sm:$0xff] %v2698_v13  ;;  %v666_v55 = vpack.c.bf16 %v2698_v13, %v2633_v49  ;;  %v2861_v17 = vmax.f32 %v2668_v38, 0.0  ;;  %v2863_v38 = vpack.c.bf16 %v2496_v2, %v2483_v61 }
  0x37   : > { %2102 = vmatpush3.bf16.msra.mxu1 %v2243_v46  ;;  %v593_v46 = vld [vmem:[#allocation2 + $0x160] sm:$0xff]  ;;  %v2676_v48 = vld [vmem:[#allocation2 + $0x50] sm:$0xff]  ;;  %v425_v8 = vmax.f32 %v2671_v40, 0.0  ;;  %v426_v9 = vmax.f32 %v2674_v41, 0.0  ;;  %v2862_v24 = vmax.f32 %v2682_v62, 0.0  ;;  %v2864_v40 = vmax.f32 %v2685_v63, 0.0 }
  0x38   : > { %2103 = vmatprep.subr.bf16.mxu1 %v2245_v51  ;;  %v657_v51 = vpack.c.bf16 %v2621_v45, %v2556_v43  ;;  %v658_v1 = vpack.c.bf16 %v594_v47, %v593_v46  ;;  %v655_v4 = vpack.c.bf16 %v2676_v48, %v2660_v19  ;;  %v665_v15 = vpack.c.bf16 %v2860_v6, %v488_v36  ;;  %v2255_v18 = vld [vmem:[%s2856_s3 + $0x1b0] sm:$0xff]  }
  0x39   : > { %2064 = vmatpush3.bf16.msra.mxu0 %v2246_v56  ;;  %v2251_v56 = vld [vmem:[%s2856_s3 + $0x1a8] sm:$0xff]   ;;  %434 = vst [vmem:[#allocation2 + $0x181] sm:$0xff] %v425_v8  ;;  %435 = vst [vmem:[#allocation2 + $0x191] sm:$0xff] %v426_v9  ;;  %v2859_v46 = vmax.f32 %v2685_v63, 0.0  ;;  %v1875_v47 = vunpack.c.l.bf16 %v1874_v26  ;;  %v669_v16 = vpack.c.bf16 %v426_v9, %v425_v8  ;;  %v671_v25 = vpack.c.bf16 %v2862_v24, %v2861_v17 }
  0x3a   : > { %2065 = vmatprep.subr.bf16.mxu0 %v2248_v10  ;;  %v2252_v10 = vld [vmem:[%s2856_s3 + $0x170] sm:$0xff]   ;;  %1362 = vmatprep.mubr.bf16.mxu1 %v658_v1  ;;  %v663_v19 = vpack.c.bf16 %v2633_v49, %v2621_v45  ;;  %v672_v41 = vpack.c.bf16 %v2864_v40, %v2698_v13 }
  0x3b   : > { %2104 = vmatpush3.bf16.msra.mxu1 %v2247_v7  ;;  %1298 = vmatmul.mubr.bf16.gmra.mrb[8].mxu0 %v655_v4  ;;  %v2254_v7 = vld [vmem:[%s2856_s3 + $0x130] sm:$0xff]   ;;  %563 = vst [vmem:[#allocation2 + $0x81] sm:$0xff] %v2859_v46  ;;  %v332_v1 = vmul.f32 %v1875_v47, %v2445_v34 }
  0x3c   : > { %1363 = vmatmul.mubr.bf16.gmra.mrb[8].mxu1 %v657_v51  ;;  %2105 = vmatprep.subr.bf16.mxu1 %v2249_v30  ;;  %v2256_v30 = vld [vmem:[%s2856_s3 + $0x178] sm:$0xff]   ;;  %v1876_v51 = vunpack.c.h.bf16 %v1874_v26 }
  0x3d   : > { %2066 = vmatpush3.bf16.msra.mxu0 %v2250_v5  ;;  %1305 = vmatprep.mubr.bf16.mxu0 %v665_v15  ;;  %v1957_v5 = vld [vmem:[%s2436_s14 + $0x8] sm:$0xff]   ;;  %v2735_v15 = vld [vmem:[#allocation2 + $0x60] sm:$0xff]  ;;  %v2749_v54 = vld [vmem:[#allocation2 + $0x70] sm:$0xff] }
  0x3e   : > { %2067 = vmatprep.subr.bf16.mxu0 %v2252_v10  ;;  %v333_v4 = vmul.f32 %v1876_v51, %v2445_v34  ;;  %v1879_v50 = vunpack.c.l.bf16 %v1957_v5  ;;  %v1880_v26 = vunpack.c.h.bf16 %v1957_v5  ;;  %v642_v10 = vpack.c.bf16 %v420_v60, %v419_v59  ;;  %v1958_v51 = vld [vmem:[%s2436_s14 + $0x10] sm:$0xff]  }
  0x3f   : > { %2106 = vmatpush3.bf16.msra.mxu1 %v2251_v56  ;;  %v2258_v56 = vld [vmem:[%s2856_s3 + $0x138] sm:$0xff]   ;;  %v1883_v11 = vunpack.c.l.bf16 %v1958_v51  ;;  %v1884_v27 = vunpack.c.h.bf16 %v1958_v51  ;;  %v644_v59 = vpack.c.bf16 %v484_v0, %v483_v58 }
  0x40   : > { %2107 = vmatprep.subr.bf16.mxu1 %v2253_v14  ;;  %v347_v14 = vadd.f32 %v2450_v37, %v332_v1  ;;  %v348_v47 = vadd.f32 %v2450_v37, %v333_v4  ;;  %v595_v46 = vld [vmem:[#allocation2 + $0x180] sm:$0xff]  ;;  %v334_v5 = vmul.f32 %v1879_v50, %v2445_v34  ;;  %v596_v6 = vld [vmem:[#allocation2 + $0x190] sm:$0xff]  ;;  %v2259_v1 = vld [vmem:[%s2856_s3 + $0x1b8] sm:$0xff]  }
  0x41   : > { %2068 = vmatpush3.bf16.msra.mxu0 %v2254_v7  ;;  %v335_v7 = vmul.f32 %v1880_v26, %v2445_v34  ;;  %v667_v50 = vpack.c.bf16 %v596_v6, %v595_v46  ;;  %v336_v53 = vmul.f32 %v1883_v11, %v2445_v34  ;;  %v337_v58 = vmul.f32 %v1884_v27, %v2445_v34 }
  0x42   : > { %2069 = vmatprep.subr.bf16.mxu0 %v2256_v30  ;;  %v355_v60 = vmax.f32 %v347_v14, 0.0  ;;  %v664_v30 = vpack.c.bf16 %v2749_v54, %v2735_v15  ;;  %v349_v4 = vadd.f32 %v2450_v37, %v334_v5  ;;  %v620_v28 = vld [vmem:[#allocation2 + $0x80] sm:$0xff] }
  0x43   : > { %2108 = vmatpush3.bf16.msra.mxu1 %v2255_v18  ;;  %v356_v18 = vmax.f32 %v348_v47, 0.0  ;;  %v350_v26 = vadd.f32 %v2450_v37, %v335_v7  ;;  %1370 = vmatprep.mubr.bf16.mxu1 %v667_v50  ;;  %v351_v47 = vadd.f32 %v2450_v37, %v336_v53  ;;  %v670_v3 = vpack.c.bf16 %v620_v28, %v2749_v54 }
  0x44   : > { %2109 = vmatprep.subr.bf16.mxu1 %v2257_v57  ;;  %v1959_v57 = vld [vmem:[%s2436_s14 + $0x18] sm:$0xff]   ;;  %1306 = vmatmul.mubr.bf16.gmra.mrb[12].mxu0 %v664_v30  ;;  %v357_v6 = vmax.f32 %v349_v4, 0.0 }
  0x45   : > { %2070 = vmatpush3.bf16.msra.mxu0 %v2258_v56  ;;  %v1887_v0 = vunpack.c.l.bf16 %v1959_v57  ;;  %v358_v46 = vmax.f32 %v350_v26, 0.0  ;;  %v1888_v14 = vunpack.c.h.bf16 %v1959_v57  ;;  %1371 = vmatmul.mubr.bf16.gmra.mrb[12].mxu1 %v666_v55  ;;  %v352_v56 = vadd.f32 %v2450_v37, %v337_v58 }
  0x46   : > { %1411 = vmatprep.mubr.bf16.mxu0 %v642_v10  ;;  %1476 = vmatprep.mubr.bf16.mxu1 %v644_v59  ;;  %v359_v27 = vmax.f32 %v351_v47, 0.0  ;;  %v641_v50 = vpack.c.bf16 %v356_v18, %v355_v60  ;;  %v643_v10 = vpack.c.bf16 %v2583_v12, %v2528_v29  ;;  %v2262_v29 = vld [vmem:[%s2856_s3 + $0x210] sm:$0xff]   ;;  %v2265_v12 = vld [vmem:[%s2856_s3 + $0x228] sm:$0xff]  }
  0x47   : > { %v338_v51 = vmul.f32 %v1887_v0, %v2445_v34  ;;  %2110 = vmatpush3.bf16.msra.mxu1 %v2259_v1  ;;  %v339_v11 = vmul.f32 %v1888_v14, %v2445_v34  ;;  %2147 = vmatprep.subr.bf16.mxu0 %v2260_v52  ;;  %v360_v5 = vmax.f32 %v352_v56, 0.0  ;;  %v2261_v1 = vld [vmem:[%s2856_s3 + $0x208] sm:$0xff]   ;;  %v651_v34 = vpack.c.bf16 %v422_v33, %v421_v32  ;;  %v2264_v32 = vld [vmem:[%s2856_s3 + $0x220] sm:$0xff]  }
  0x48   : > { %2171 = vmatprep.subr.bf16.mxu1 %v2260_v52  ;;  %v650_v21 = vpack.c.bf16 %v358_v46, %v357_v6 }
  0x49   : > { %v353_v7 = vadd.f32 %v2450_v37, %v338_v51  ;;  %v354_v55 = vadd.f32 %v2450_v37, %v339_v11  ;;  %v653_v37 = vpack.c.bf16 %v486_v42, %v485_v31  ;;  %v662_v31 = vpack.c.bf16 %v488_v36, %v487_v35  ;;  %v2266_v35 = vld [vmem:[%s2856_s3 + $0x230] sm:$0xff]  }
  0x4a   : > { %v659_v33 = vpack.c.bf16 %v360_v5, %v359_v27  ;;  %v661_v42 = vpack.c.bf16 %v2735_v15, %v2676_v48  ;;  %v2865_v48 = vpack.c.bf16 %v2556_v43, %v2539_v39 }
  0x4b   : > { %v361_v30 = vmax.f32 %v353_v7, 0.0  ;;  %v362_v59 = vmax.f32 %v354_v55, 0.0 }
  0x4c   : > { %1412 = vmatmul.mubr.bf16.vlgmr.msra.gmra.mrb[16].mxu0 %v641_v50 }
  0x4d   : > { %1477 = vmatmul.mubr.bf16.vlgmr.msra.gmra.mrb[16].mxu1 %v643_v10  ;;  %2148 = vmatpush3.bf16.msra.mxu0 %v2260_v52  ;;  %v668_v36 = vpack.c.bf16 %v362_v59, %v361_v30 }
  0x4e   : > { %2179 = vmatpush3.bf16.msra.mxu1 %v2260_v52  ;;  %2149 = vmatprep.subr.bf16.mxu0 %v2261_v1 }
  0x4f   : > { %2172 = vmatprep.subr.bf16.mxu1 %v2261_v1  ;;  %1419 = vmatprep.mubr.bf16.mxu0 %v651_v34 }
  0x50   : > { %1484 = vmatprep.mubr.bf16.mxu1 %v653_v37 }
  0x51   : > { %2150 = vmatpush3.bf16.msra.mxu0 %v2261_v1 }
  0x52   : > { %2180 = vmatpush3.bf16.msra.mxu1 %v2261_v1  ;;  %2151 = vmatprep.subr.bf16.mxu0 %v2262_v29 }
  0x53   : > { %2173 = vmatprep.subr.bf16.mxu1 %v2262_v29 }
  0x54   : > { %1420 = vmatmul.mubr.bf16.gmra.mrb[20].mxu0 %v650_v21 }
  0x55   : > { %1485 = vmatmul.mubr.bf16.gmra.mrb[20].mxu1 %v652_v22  ;;  %2152 = vmatpush3.bf16.msra.mxu0 %v2262_v29 }
  0x56   : > { %2181 = vmatpush3.bf16.msra.mxu1 %v2262_v29  ;;  %2153 = vmatprep.subr.bf16.mxu0 %v2263_v20 }
  0x57   : > { %2174 = vmatprep.subr.bf16.mxu1 %v2263_v20  ;;  %1427 = vmatprep.mubr.bf16.mxu0 %v660_v23 }
  0x58   : > { %1492 = vmatprep.mubr.bf16.mxu1 %v662_v31 }
  0x59   : > { %2154 = vmatpush3.bf16.msra.mxu0 %v2263_v20 }
  0x5a   : > { %2182 = vmatpush3.bf16.msra.mxu1 %v2263_v20  ;;  %2155 = vmatprep.subr.bf16.mxu0 %v2264_v32 }
  0x5b   : > { %2175 = vmatprep.subr.bf16.mxu1 %v2264_v32 }
  0x5c   : > { %1428 = vmatmul.mubr.bf16.gmra.mrb[24].mxu0 %v659_v33 }
  0x5d   : > { %1493 = vmatmul.mubr.bf16.gmra.mrb[24].mxu1 %v661_v42  ;;  %2156 = vmatpush3.bf16.msra.mxu0 %v2264_v32 }
  0x5e   : > { %2183 = vmatpush3.bf16.msra.mxu1 %v2264_v32  ;;  %2157 = vmatprep.subr.bf16.mxu0 %v2265_v12 }
  0x5f   : > { %2176 = vmatprep.subr.bf16.mxu1 %v2265_v12  ;;  %1435 = vmatprep.mubr.bf16.mxu0 %v669_v16 }
  0x60   : > { %1500 = vmatprep.mubr.bf16.mxu1 %v671_v25 }
  0x61   : > { %2158 = vmatpush3.bf16.msra.mxu0 %v2265_v12 }
  0x62   : > { %2184 = vmatpush3.bf16.msra.mxu1 %v2265_v12  ;;  %2159 = vmatprep.subr.bf16.mxu0 %v2266_v35 }
  0x63   : > { %2177 = vmatprep.subr.bf16.mxu1 %v2266_v35 }
  0x64   : > { %1436 = vmatmul.mubr.bf16.gmra.mrb[28].mxu0 %v668_v36 }
  0x65   : > { %1501 = vmatmul.mubr.bf16.gmra.mrb[28].mxu1 %v670_v3  ;;  %2160 = vmatpush3.bf16.msra.mxu0 %v2266_v35 }
  0x66   : > { %2185 = vmatpush3.bf16.msra.mxu1 %v2266_v35  ;;  %2161 = vmatprep.subr.bf16.mxu0 %v2267_v44 }
  0x67   : > { %2178 = vmatprep.subr.bf16.mxu1 %v2267_v44  ;;  %2163 = vmatprep.mubr.bf16.mxu0 %v2863_v38 }
  0x68   : > { %2167 = vmatprep.mubr.bf16.mxu1 %v663_v19 }
  0x69   : > { %2162 = vmatpush3.bf16.msra.mxu0 %v2267_v44 }
  0x6a   : > { %2186 = vmatpush3.bf16.msra.mxu1 %v2267_v44 }
  0x6c   : > { %2164 = vmatmul.mubr.bf16.vlgmr.msra.gmra.mrb[32].mxu0 %v2865_v48 }
  0x6d   : > { %2168 = vmatmul.mubr.bf16.vlgmr.msra.gmra.mrb[32].mxu1 %v672_v41 }
  0xfb   : > { %v1991_v45 = vpop.f32.mrb[0].mxu0  ;;  %v2031_v49 = vpop.f32.mrb[0].mxu1 }
  0xfc   : > { %v1992_v62 = vpop.f32.mrb[1].mxu0  ;;  %v2032_v9 = vpop.f32.mrb[1].mxu1 }
  0xfd   : > { %v1993_v8 = vadd.f32 %v1992_v62, %v1991_v45  ;;  %v1994_v15 = vpop.f32.mrb[2].mxu0  ;;  %v2033_v61 = vadd.f32 %v2032_v9, %v2031_v49  ;;  %v2034_v2 = vpop.f32.mrb[2].mxu1 }
  0xfe   : > { %v1995_v54 = vpop.f32.mrb[3].mxu0  ;;  %v2035_v18 = vpop.f32.mrb[3].mxu1 }
  0xff   : > { %v1996_v60 = vadd.f32 %v1995_v54, %v1994_v15  ;;  %v1349_v4 = vadd.f32 %v2033_v61, %v1993_v8  ;;  %v2036_v63 = vadd.f32 %v2035_v18, %v2034_v2 }
 0x101   : > { %v1352_v13 = vadd.f32 %v2036_v63, %v1996_v60 }
 0x103   : > { %v1997_v26 = vpop.f32.mrb[4].mxu0 }
 0x104   : > { %v1998_v52 = vpop.f32.mrb[5].mxu0 }
 0x105   : > { %v2037_v57 = vpop.f32.mrb[4].mxu1  ;;  %v1999_v43 = vadd.f32 %v1998_v52, %v1997_v26  ;;  %v2000_v58 = vpop.f32.mrb[6].mxu0 }
 0x106   : > { %v2038_v39 = vpop.f32.mrb[5].mxu1  ;;  %v2001_v6 = vpop.f32.mrb[7].mxu0 }
 0x107   : > { %v2039_v53 = vadd.f32 %v2038_v39, %v2037_v57  ;;  %v2040_v0 = vpop.f32.mrb[6].mxu1  ;;  %v2002_v47 = vadd.f32 %v2001_v6, %v2000_v58 }
 0x108   : > { %v2041_v46 = vpop.f32.mrb[7].mxu1 }
 0x109   : > { %v1357_v14 = vadd.f32 %v2039_v53, %v1999_v43  ;;  %v2042_v56 = vadd.f32 %v2041_v46, %v2040_v0 }
 0x10b   : > { %v1360_v51 = vadd.f32 %v2042_v56, %v2002_v47 }
 0x10e   : > { %v2003_v11 = vpop.f32.mrb[8].mxu0 }
 0x10f   : > { %v2043_v27 = vpop.f32.mrb[8].mxu1  ;;  %v2004_v5 = vpop.f32.mrb[9].mxu0 }
 0x110   : > { %v2005_v7 = vadd.f32 %v2004_v5, %v2003_v11  ;;  %v2044_v50 = vpop.f32.mrb[9].mxu1  ;;  %v2006_v55 = vpop.f32.mrb[10].mxu0 }
 0x111   : > { %v2045_v10 = vadd.f32 %v2044_v50, %v2043_v27  ;;  %v2046_v30 = vpop.f32.mrb[10].mxu1  ;;  %v2007_v1 = vpop.f32.mrb[11].mxu0 }
 0x112   : > { %v2008_v59 = vadd.f32 %v2007_v1, %v2006_v55  ;;  %v2047_v34 = vpop.f32.mrb[11].mxu1 }
 0x113   : > { %v1365_v37 = vadd.f32 %v2045_v10, %v2005_v7  ;;  %v2048_v29 = vadd.f32 %v2047_v34, %v2046_v30 }
 0x115   : > { %v1368_v21 = vadd.f32 %v2048_v29, %v2008_v59 }
 0x117   : > { %v2009_v22 = vpop.f32.mrb[12].mxu0 }
 0x118   : > { %v2049_v20 = vpop.f32.mrb[12].mxu1  ;;  %v2010_v23 = vpop.f32.mrb[13].mxu0 }
 0x119   : > { %v2011_v31 = vadd.f32 %v2010_v23, %v2009_v22  ;;  %v2050_v32 = vpop.f32.mrb[13].mxu1  ;;  %v2012_v33 = vpop.f32.mrb[14].mxu0 }
 0x11a   : > { %v2051_v42 = vadd.f32 %v2050_v32, %v2049_v20  ;;  %v2052_v12 = vpop.f32.mrb[14].mxu1  ;;  %v2013_v16 = vpop.f32.mrb[15].mxu0 }
 0x11b   : > { %v2014_v17 = vadd.f32 %v2013_v16, %v2012_v33  ;;  %v2053_v24 = vpop.f32.mrb[15].mxu1 }
 0x11c   : > { %v1373_v25 = vadd.f32 %v2051_v42, %v2011_v31  ;;  %v2054_v28 = vadd.f32 %v2053_v24, %v2052_v12 }
 0x11e   : > { %v1376_v35 = vadd.f32 %v2054_v28, %v2014_v17 }
 0x11f   : > { %v2071_v36 = vpop.f32.mrb[16].mxu0 }
 0x120   : > { %v2072_v3 = vpop.f32.mrb[17].mxu0  ;;  %v2111_v44 = vpop.f32.mrb[16].mxu1 }
 0x121   : > { %v2073_v19 = vadd.f32 %v2072_v3, %v2071_v36  ;;  %v2074_v38 = vpop.f32.mrb[18].mxu0  ;;  %v2112_v40 = vpop.f32.mrb[17].mxu1 }
 0x122   : > { %v2075_v41 = vpop.f32.mrb[19].mxu0  ;;  %v2113_v48 = vadd.f32 %v2112_v40, %v2111_v44  ;;  %v2114_v45 = vpop.f32.mrb[18].mxu1 }
 0x123   : > { %v1414_v49 = vadd.f32 %v2073_v19, %v1349_v4  ;;  %v2076_v62 = vadd.f32 %v2075_v41, %v2074_v38  ;;  %v2115_v8 = vpop.f32.mrb[19].mxu1 }
 0x124   : > { %v2116_v9 = vadd.f32 %v2115_v8, %v2114_v45 }
 0x125   : > { %v1417_v15 = vadd.f32 %v2076_v62, %v1352_v13  ;;  %v1479_v61 = vadd.f32 %v2113_v48, %v1414_v49 }
 0x127   : > { %v2077_v2 = vpop.f32.mrb[20].mxu0  ;;  %v2839_v54 = vadd.f32 %v2116_v9, %v1417_v15 }
 0x128   : > { %v2078_v60 = vpop.f32.mrb[21].mxu0  ;;  %v2117_v18 = vpop.f32.mrb[20].mxu1 }
 0x129   : > { %v2079_v63 = vadd.f32 %v2078_v60, %v2077_v2  ;;  %v2080_v26 = vpop.f32.mrb[22].mxu0  ;;  %v2118_v57 = vpop.f32.mrb[21].mxu1 }
 0x12a   : > { %v2081_v52 = vpop.f32.mrb[23].mxu0  ;;  %v2119_v39 = vadd.f32 %v2118_v57, %v2117_v18  ;;  %v2120_v43 = vpop.f32.mrb[22].mxu1 }
 0x12b   : > { %v1422_v53 = vadd.f32 %v2079_v63, %v1357_v14  ;;  %v2082_v58 = vadd.f32 %v2081_v52, %v2080_v26  ;;  %v2121_v0 = vpop.f32.mrb[23].mxu1 }
 0x12c   : > { %v2122_v4 = vadd.f32 %v2121_v0, %v2120_v43 }
 0x12d   : > { %v1425_v6 = vadd.f32 %v2082_v58, %v1360_v51  ;;  %v1487_v46 = vadd.f32 %v2119_v39, %v1422_v53 }
 0x12f   : > { %v2083_v47 = vpop.f32.mrb[24].mxu0  ;;  %v1490_v13 = vadd.f32 %v2122_v4, %v1425_v6 }
 0x130   : > { %v2084_v56 = vpop.f32.mrb[25].mxu0  ;;  %v2123_v11 = vpop.f32.mrb[24].mxu1 }
 0x131   : > { %v2085_v27 = vadd.f32 %v2084_v56, %v2083_v47  ;;  %v2086_v5 = vpop.f32.mrb[26].mxu0  ;;  %v2124_v7 = vpop.f32.mrb[25].mxu1 }
 0x132   : > { %v2087_v50 = vpop.f32.mrb[27].mxu0  ;;  %v2125_v55 = vadd.f32 %v2124_v7, %v2123_v11  ;;  %v2126_v10 = vpop.f32.mrb[26].mxu1 }
 0x133   : > { %v1430_v30 = vadd.f32 %v2085_v27, %v1365_v37  ;;  %v2088_v1 = vadd.f32 %v2087_v50, %v2086_v5  ;;  %v2127_v59 = vpop.f32.mrb[27].mxu1 }
 0x134   : > { %v2128_v34 = vadd.f32 %v2127_v59, %v2126_v10 }
 0x135   : > { %v1433_v14 = vadd.f32 %v2088_v1, %v1368_v21  ;;  %v1495_v29 = vadd.f32 %v2125_v55, %v1430_v30 }
 0x137   : > { %v2089_v22 = vpop.f32.mrb[28].mxu0  ;;  %v1498_v20 = vadd.f32 %v2128_v34, %v1433_v14 }
 0x138   : > { %v2090_v51 = vpop.f32.mrb[29].mxu0  ;;  %v2129_v23 = vpop.f32.mrb[28].mxu1 }
 0x139   : > { %v2091_v31 = vadd.f32 %v2090_v51, %v2089_v22  ;;  %v2092_v32 = vpop.f32.mrb[30].mxu0  ;;  %v2130_v33 = vpop.f32.mrb[29].mxu1 }
 0x13a   : > { %v2093_v42 = vpop.f32.mrb[31].mxu0  ;;  %v2131_v12 = vadd.f32 %v2130_v33, %v2129_v23  ;;  %v2132_v16 = vpop.f32.mrb[30].mxu1 }
 0x13b   : > { %v1438_v17 = vadd.f32 %v2091_v31, %v1373_v25  ;;  %v2094_v24 = vadd.f32 %v2093_v42, %v2092_v32  ;;  %v2133_v28 = vpop.f32.mrb[31].mxu1 }
 0x13c   : > { %v2134_v37 = vadd.f32 %v2133_v28, %v2132_v16 }
 0x13d   : > { %v1441_v36 = vadd.f32 %v2094_v24, %v1376_v35  ;;  %v1503_v3 = vadd.f32 %v2131_v12, %v1438_v17 }
 0x13f   : > { %v2165_v44 = vpop.f32.mrb[32].mxu0  ;;  %v1506_v21 = vadd.f32 %v2134_v37, %v1441_v36 }
 0x140   : > { %v1552_v19 = vadd.f32 %v2165_v44, %v1487_v46  ;;  %v2169_v38 = vpop.f32.mrb[32].mxu1  ;;  %v1543_v40 = vpop.f32.mrb[33].mxu0 }
 0x141   : > { %v1568_v41 = vadd.f32 %v2169_v38, %v1503_v3  ;;  %v1544_v48 = vadd.f32 %v1543_v40, %v1479_v61  ;;  %v1559_v45 = vpop.f32.mrb[33].mxu1  ;;  %v2166_v49 = vpop.f32.mrb[34].mxu0 }
 0x142   : > { %v1560_v62 = vadd.f32 %v1559_v45, %v1495_v29  ;;  %v1555_v8 = vadd.f32 %v2166_v49, %v1490_v13  ;;  %v2170_v9 = vpop.f32.mrb[34].mxu1  ;;  %v1546_v15 = vpop.f32.mrb[35].mxu0  ;;  %v1629_v53 = vmul.f32 %v1552_v19, %v1552_v19 }
 0x143   : > { %v1571_v25 = vadd.f32 %v2170_v9, %v1506_v21  ;;  %v1547_v35 = vadd.f32 %v1546_v15, %v2839_v54  ;;  %v1562_v2 = vpop.f32.mrb[35].mxu1  ;;  %v1627_v61 = vmul.f32 %v1544_v48, %v1544_v48  ;;  %v1633_v5 = vmul.f32 %v1568_v41, %v1568_v41 }
 0x144   : > { %v1945_v60 = vpack.c.bf16 %v1555_v8, %v1552_v19  ;;  %v1563_v18 = vadd.f32 %v1562_v2, %v1498_v20  ;;  %v1630_v4 = vmul.f32 %v1555_v8, %v1555_v8  ;;  %v1631_v46 = vmul.f32 %v1560_v62, %v1560_v62 }
 0x145   : > { %v1955_v63 = vpack.c.bf16 %v1571_v25, %v1568_v41  ;;  %v1940_v26 = vpack.c.bf16 %v1547_v35, %v1544_v48  ;;  %v1614_v57 = vadd.f32 %v1547_v35, %v1544_v48  ;;  %v1628_v52 = vmul.f32 %v1547_v35, %v1547_v35 }
 0x146   : > { %1972 = vst [vmem:[%s231_s15 + $0x8] sm:$0xff] %v1945_v60   ;;  %v1950_v39 = vpack.c.bf16 %v1563_v18, %v1560_v62  ;;  %v1632_v56 = vmul.f32 %v1563_v18, %v1563_v18  ;;  %v1634_v55 = vmul.f32 %v1571_v25, %v1571_v25 }
 0x147   : > { %1974 = vst [vmem:[%s231_s15 + $0x18] sm:$0xff] %v1955_v63   ;;  %1941 = vst [vmem:[%s231_s15] sm:$0xff] %v1940_v26   ;;  %v1615_v43 = vadd.f32 %v1614_v57, %v1552_v19  ;;  %v1635_v58 = vadd.f32 %v1628_v52, %v1627_v61 }
 0x148   : > { %1973 = vst [vmem:[%s231_s15 + $0x10] sm:$0xff] %v1950_v39  }
 0x149   : > { %v1616_v0 = vadd.f32 %v1615_v43, %v1555_v8  ;;  %v1636_v6 = vadd.f32 %v1635_v58, %v1629_v53 }
 0x14b   : > { %v1617_v54 = vadd.f32 %v1616_v0, %v1560_v62  ;;  %v1637_v47 = vadd.f32 %v1636_v6, %v1630_v4 }
 0x14d   : > { %v1618_v13 = vadd.f32 %v1617_v54, %v1563_v18  ;;  %v1638_v11 = vadd.f32 %v1637_v47, %v1631_v46 }
 0x14f   : > { %v1619_v27 = vadd.f32 %v1618_v13, %v1568_v41  ;;  %v1639_v7 = vadd.f32 %v1638_v11, %v1632_v56 }
 0x151   : > { %v1620_v50 = vadd.f32 %v1619_v27, %v1571_v25  ;;  %v1640_v10 = vadd.f32 %v1639_v7, %v1633_v5 }
 0x153   : > { %v1621_v30 = vrot.slane %v1620_v50, 4  ;;  %v1641_v1 = vadd.f32 %v1640_v10, %v1634_v55 }
 0x155   : > { %v1622_v59 = vadd.f32 %v1621_v30, %v1620_v50  ;;  %v1642_v34 = vrot.slane %v1641_v1, 4 }
 0x157   : > { %v1623_v14 = vrot.slane %v1622_v59, 2  ;;  %v1643_v29 = vadd.f32 %v1642_v34, %v1641_v1 }
 0x159   : > { %v1624_v22 = vadd.f32 %v1623_v14, %v1622_v59  ;;  %v1644_v20 = vrot.slane %v1643_v29, 2 }
 0x15b   : > { %v1625_v51 = vrot.slane %v1624_v22, 1  ;;  %v1645_v23 = vadd.f32 %v1644_v20, %v1643_v29 }
 0x15d   : > { %v1646_v31 = vrot.slane %v1645_v23, 1  ;;  %v1626_v32 = vadd.f32 %v1625_v51, %v1624_v22 }
 0x15f   : > { %v1647_v33 = vadd.f32 %v1646_v31, %v1645_v23 }
 0x161   : > { %v1649_v42 = vsel %vm1648_vm0, %v1626_v32, %v1647_v33 }
 0x162   : > { %v1651_v12 = vsel %vm1650_vm1, %v1649_v42, 0.0 }
 0x163   : > { %1652 = vst [vmem:[%s235_s21] sm:$0xff] %v1651_v12 }
 0x164 PF: > { %s16_s18 = sadd.s32 1, %s2274_s18  }
 0x165   : > { %p13_p4 = scmp.ge.s32.totalorder %s16_s18, 4  }
 0x167   :  { %15 = sbr.rel (!%p13_p4) target bundleno = 1 (0x1), region = 86 }

// kernel: bottleneck_block_forward.9
= control target key start
LH: loop header
LB: loop body
LE: loop exit
PB: predicated region body
PF: predicated region fallthrough
CT: control target
= control target key end

     0   :  { %s528_s0 = inlined_call_operand.vmem [shape: bf16[128,128], index: 0, kind: input, shape index: {}]   ;;  %s529_s1 = inlined_call_operand.vmem [shape: f32[1,128], index: 1, kind: input, shape index: {}]   ;;  %s530_s2 = inlined_call_operand.vmem [shape: f32[1,128], index: 2, kind: input, shape index: {}]   ;;  %s531_s3 = inlined_call_operand.vmem [shape: bf16[128,128], index: 3, kind: input, shape index: {}]   ;;  %s532_s4 = inlined_call_operand.vmem [shape: f32[1,128], index: 4, kind: input, shape index: {}]   ;;  %s533_s5 = inlined_call_operand.vmem [shape: f32[1,128], index: 5, kind: input, shape index: {}]   ;;  %s534_s6 = inlined_call_operand.vmem [shape: f32[128,128], index: 6, kind: output, shape index: {}]  }
   0x1   :  { %v236_v0 = vld [vmem:[%s528_s0] sm:$0xff]   ;;  %v299_v9 = vld [vmem:[%s528_s0 + $0x8] sm:$0xff]   ;;  %v300_v20 = vld [vmem:[%s528_s0 + $0x10] sm:$0xff]  }
   0x2   :  { %v354_v1 = vld [vmem:[%s529_s1] ss:$0 sm:$0xff]  ;;  %v237_v2 = vunpack.c.l.bf16 %v236_v0  ;;  %v238_v5 = vunpack.c.h.bf16 %v236_v0  ;;  %v306_v10 = vld [vmem:[%s531_s3 + $0x8] sm:$0xff]   ;;  %v241_v14 = vunpack.c.l.bf16 %v299_v9  ;;  %v242_v18 = vunpack.c.h.bf16 %v299_v9  ;;  %v307_v21 = vld [vmem:[%s531_s3 + $0x10] sm:$0xff]  }
   0x3   :  { %v268_v3 = vld [vmem:[%s531_s3] sm:$0xff]   ;;  %v273_v15 = vunpack.c.l.bf16 %v306_v10  ;;  %v274_v19 = vunpack.c.h.bf16 %v306_v10  ;;  %v245_v32 = vunpack.c.l.bf16 %v300_v20  ;;  %v277_v33 = vunpack.c.l.bf16 %v307_v21  ;;  %v301_v42 = vld [vmem:[%s528_s0 + $0x18] sm:$0xff]  }
   0x4   :  { %v362_v4 = vld [vmem:[%s532_s4] ss:$0 sm:$0xff]  ;;  %v269_v7 = vunpack.c.l.bf16 %v268_v3  ;;  %v270_v8 = vunpack.c.h.bf16 %v268_v3  ;;  %v62_v11 = vmul.f32 %v237_v2, %v354_v1  ;;  %v63_v13 = vmul.f32 %v238_v5, %v354_v1  ;;  %v308_v43 = vld [vmem:[%s531_s3 + $0x18] sm:$0xff]  }
   0x5   :  { %v367_v6 = vld [vmem:[%s530_s2] ss:$0 sm:$0xff]  ;;  %v64_v24 = vmul.f32 %v241_v14, %v354_v1  ;;  %v142_v25 = vmul.f32 %v273_v15, %v362_v4  ;;  %v65_v28 = vmul.f32 %v242_v18, %v354_v1  ;;  %v143_v29 = vmul.f32 %v274_v19, %v362_v4  ;;  %v303_v14 = vld [vmem:[%s528_s0 + $0x28] sm:$0xff]  }
   0x6   :  { %v379_v12 = vld [vmem:[%s533_s5] ss:$0 sm:$0xff]  ;;  %v140_v16 = vmul.f32 %v269_v7, %v362_v4  ;;  %v141_v17 = vmul.f32 %v270_v8, %v362_v4  ;;  %v85_v22 = vadd.f32 %v367_v6, %v62_v11  ;;  %v86_v23 = vadd.f32 %v367_v6, %v63_v13  ;;  %v310_v19 = vld [vmem:[%s531_s3 + $0x28] sm:$0xff]  }
   0x7   :  { %v87_v30 = vadd.f32 %v367_v6, %v64_v24  ;;  %v165_v31 = vadd.f32 %v379_v12, %v142_v25  ;;  %v88_v36 = vadd.f32 %v367_v6, %v65_v28  ;;  %v166_v37 = vadd.f32 %v379_v12, %v143_v29  ;;  %v302_v52 = vld [vmem:[%s528_s0 + $0x20] sm:$0xff]  }
   0x8   :  { %v163_v26 = vadd.f32 %v379_v12, %v140_v16  ;;  %v164_v27 = vadd.f32 %v379_v12, %v141_v17  ;;  %v66_v39 = vmul.f32 %v245_v32, %v354_v1  ;;  %v144_v40 = vmul.f32 %v277_v33, %v362_v4  ;;  %v309_v57 = vld [vmem:[%s531_s3 + $0x20] sm:$0xff]   ;;  %v304_v32 = vld [vmem:[%s528_s0 + $0x30] sm:$0xff]  }
   0x9   :  { %v181_v38 = vadd.f32 %v165_v31, %v87_v30  ;;  %v246_v41 = vunpack.c.h.bf16 %v300_v20  ;;  %v182_v46 = vadd.f32 %v166_v37, %v88_v36  ;;  %v278_v47 = vunpack.c.h.bf16 %v307_v21  ;;  %v311_v33 = vld [vmem:[%s531_s3 + $0x30] sm:$0xff]  }
   0xa   :  { %v179_v34 = vadd.f32 %v163_v26, %v85_v22  ;;  %v180_v35 = vadd.f32 %v164_v27, %v86_v23  ;;  %v89_v49 = vadd.f32 %v367_v6, %v66_v39  ;;  %v167_v50 = vadd.f32 %v379_v12, %v144_v40 }
   0xb   :  { %v197_v48 = vmax.f32 %v181_v38, 0.0  ;;  %v67_v51 = vmul.f32 %v246_v41, %v354_v1  ;;  %v198_v53 = vmax.f32 %v182_v46, 0.0  ;;  %v145_v54 = vmul.f32 %v278_v47, %v362_v4  ;;  %v305_v46 = vld [vmem:[%s528_s0 + $0x38] sm:$0xff]  }
   0xc   :  { %v195_v44 = vmax.f32 %v179_v34, 0.0  ;;  %v196_v45 = vmax.f32 %v180_v35, 0.0  ;;  %v249_v55 = vunpack.c.l.bf16 %v301_v42  ;;  %v281_v56 = vunpack.c.l.bf16 %v308_v43 }
   0xd   :  { %213 = vst [vmem:[%s534_s6 + $0x10] sm:$0xff] %v197_v48  ;;  %v183_v58 = vadd.f32 %v167_v50, %v89_v49  ;;  %v90_v59 = vadd.f32 %v367_v6, %v67_v51  ;;  %v250_v60 = vunpack.c.h.bf16 %v301_v42  ;;  %v282_v61 = vunpack.c.h.bf16 %v308_v43  ;;  %214 = vst [vmem:[%s534_s6 + $0x18] sm:$0xff] %v198_v53 }
   0xe   :  { %211 = vst [vmem:[%s534_s6] sm:$0xff] %v195_v44  ;;  %212 = vst [vmem:[%s534_s6 + $0x8] sm:$0xff] %v196_v45  ;;  %v168_v62 = vadd.f32 %v379_v12, %v145_v54  ;;  %v68_v63 = vmul.f32 %v249_v55, %v354_v1  ;;  %v146_v0 = vmul.f32 %v281_v56, %v362_v4  ;;  %v253_v2 = vunpack.c.l.bf16 %v302_v52  ;;  %v312_v55 = vld [vmem:[%s531_s3 + $0x38] sm:$0xff]  }
   0xf   :  { %v199_v3 = vmax.f32 %v183_v58, 0.0  ;;  %v69_v5 = vmul.f32 %v250_v60, %v354_v1  ;;  %v147_v7 = vmul.f32 %v282_v61, %v362_v4  ;;  %v285_v8 = vunpack.c.l.bf16 %v309_v57 }
  0x10   :  { %v184_v9 = vadd.f32 %v168_v62, %v90_v59  ;;  %v91_v10 = vadd.f32 %v367_v6, %v68_v63  ;;  %v169_v11 = vadd.f32 %v379_v12, %v146_v0  ;;  %v70_v13 = vmul.f32 %v253_v2, %v354_v1 }
  0x11   :  { %215 = vst [vmem:[%s534_s6 + $0x20] sm:$0xff] %v199_v3  ;;  %v92_v15 = vadd.f32 %v367_v6, %v69_v5  ;;  %v170_v16 = vadd.f32 %v379_v12, %v147_v7  ;;  %v148_v17 = vmul.f32 %v285_v8, %v362_v4  ;;  %v254_v18 = vunpack.c.h.bf16 %v302_v52 }
  0x12   :  { %v200_v20 = vmax.f32 %v184_v9, 0.0  ;;  %v185_v21 = vadd.f32 %v169_v11, %v91_v10  ;;  %v93_v22 = vadd.f32 %v367_v6, %v70_v13  ;;  %v286_v23 = vunpack.c.h.bf16 %v309_v57 }
  0x13   :  { %v186_v24 = vadd.f32 %v170_v16, %v92_v15  ;;  %v171_v25 = vadd.f32 %v379_v12, %v148_v17  ;;  %v71_v26 = vmul.f32 %v254_v18, %v354_v1  ;;  %v257_v27 = vunpack.c.l.bf16 %v303_v14 }
  0x14   :  { %216 = vst [vmem:[%s534_s6 + $0x28] sm:$0xff] %v200_v20  ;;  %v201_v28 = vmax.f32 %v185_v21, 0.0  ;;  %v149_v29 = vmul.f32 %v286_v23, %v362_v4  ;;  %v289_v30 = vunpack.c.l.bf16 %v310_v19  ;;  %v258_v31 = vunpack.c.h.bf16 %v303_v14 }
  0x15   :  { %v202_v34 = vmax.f32 %v186_v24, 0.0  ;;  %v187_v35 = vadd.f32 %v171_v25, %v93_v22  ;;  %v94_v36 = vadd.f32 %v367_v6, %v71_v26  ;;  %v72_v37 = vmul.f32 %v257_v27, %v354_v1 }
  0x16   :  { %217 = vst [vmem:[%s534_s6 + $0x30] sm:$0xff] %v201_v28  ;;  %v172_v38 = vadd.f32 %v379_v12, %v149_v29  ;;  %v150_v39 = vmul.f32 %v289_v30, %v362_v4  ;;  %v73_v40 = vmul.f32 %v258_v31, %v354_v1  ;;  %v290_v41 = vunpack.c.h.bf16 %v310_v19 }
  0x17   :  { %218 = vst [vmem:[%s534_s6 + $0x38] sm:$0xff] %v202_v34  ;;  %v203_v42 = vmax.f32 %v187_v35, 0.0  ;;  %v95_v43 = vadd.f32 %v367_v6, %v72_v37  ;;  %v261_v44 = vunpack.c.l.bf16 %v304_v32  ;;  %v293_v45 = vunpack.c.l.bf16 %v311_v33 }
  0x18   :  { %v188_v47 = vadd.f32 %v172_v38, %v94_v36  ;;  %v173_v48 = vadd.f32 %v379_v12, %v150_v39  ;;  %v96_v49 = vadd.f32 %v367_v6, %v73_v40  ;;  %v151_v50 = vmul.f32 %v290_v41, %v362_v4 }
  0x19   :  { %219 = vst [vmem:[%s534_s6 + $0x40] sm:$0xff] %v203_v42  ;;  %v74_v51 = vmul.f32 %v261_v44, %v354_v1  ;;  %v152_v52 = vmul.f32 %v293_v45, %v362_v4  ;;  %v262_v53 = vunpack.c.h.bf16 %v304_v32  ;;  %v294_v54 = vunpack.c.h.bf16 %v311_v33 }
  0x1a   :  { %v204_v56 = vmax.f32 %v188_v47, 0.0  ;;  %v189_v57 = vadd.f32 %v173_v48, %v95_v43  ;;  %v174_v58 = vadd.f32 %v379_v12, %v151_v50  ;;  %v265_v59 = vunpack.c.l.bf16 %v305_v46 }
  0x1b   :  { %v97_v60 = vadd.f32 %v367_v6, %v74_v51  ;;  %v175_v61 = vadd.f32 %v379_v12, %v152_v52  ;;  %v75_v62 = vmul.f32 %v262_v53, %v354_v1  ;;  %v153_v63 = vmul.f32 %v294_v54, %v362_v4 }
  0x1c   :  { %220 = vst [vmem:[%s534_s6 + $0x48] sm:$0xff] %v204_v56  ;;  %v205_v0 = vmax.f32 %v189_v57, 0.0  ;;  %v190_v2 = vadd.f32 %v174_v58, %v96_v49  ;;  %v76_v3 = vmul.f32 %v265_v59, %v354_v1  ;;  %v297_v5 = vunpack.c.l.bf16 %v312_v55 }
  0x1d   :  { %v191_v7 = vadd.f32 %v175_v61, %v97_v60  ;;  %v98_v8 = vadd.f32 %v367_v6, %v75_v62  ;;  %v176_v9 = vadd.f32 %v379_v12, %v153_v63  ;;  %v266_v10 = vunpack.c.h.bf16 %v305_v46 }
  0x1e   :  { %221 = vst [vmem:[%s534_s6 + $0x50] sm:$0xff] %v205_v0  ;;  %v206_v11 = vmax.f32 %v190_v2, 0.0  ;;  %v99_v13 = vadd.f32 %v367_v6, %v76_v3  ;;  %v154_v14 = vmul.f32 %v297_v5, %v362_v4  ;;  %v298_v15 = vunpack.c.h.bf16 %v312_v55 }
  0x1f   :  { %v207_v16 = vmax.f32 %v191_v7, 0.0  ;;  %v192_v17 = vadd.f32 %v176_v9, %v98_v8  ;;  %v77_v18 = vmul.f32 %v266_v10, %v354_v1 }
  0x20   :  { %222 = vst [vmem:[%s534_s6 + $0x58] sm:$0xff] %v206_v11  ;;  %v177_v19 = vadd.f32 %v379_v12, %v154_v14  ;;  %v155_v20 = vmul.f32 %v298_v15, %v362_v4 }
  0x21   :  { %223 = vst [vmem:[%s534_s6 + $0x60] sm:$0xff] %v207_v16  ;;  %v208_v21 = vmax.f32 %v192_v17, 0.0  ;;  %v100_v22 = vadd.f32 %v367_v6, %v77_v18 }
  0x22   :  { %v193_v23 = vadd.f32 %v177_v19, %v99_v13  ;;  %v178_v24 = vadd.f32 %v379_v12, %v155_v20 }
  0x23   :  { %224 = vst [vmem:[%s534_s6 + $0x68] sm:$0xff] %v208_v21 }
  0x24   :  { %v209_v1 = vmax.f32 %v193_v23, 0.0  ;;  %v194_v25 = vadd.f32 %v178_v24, %v100_v22 }
  0x26   :  { %225 = vst [vmem:[%s534_s6 + $0x70] sm:$0xff] %v209_v1  ;;  %v210_v4 = vmax.f32 %v194_v25, 0.0 }
  0x28   :  { %226 = vst [vmem:[%s534_s6 + $0x78] sm:$0xff] %v210_v4 }

</bundles_post_ra>
